<compile_context>
chip_gen: v7x
topology: tpu7x:2x2x1
jax: 0.10.0
libtpu: 0.0.40
codegen_flags: <defaults>
</compile_context>

<pallas_src>
import functools

import jax
import jax.numpy as jnp
from jax.experimental import pallas as pl
from jax.experimental.pallas import tpu as pltpu

HIDDEN = 400
LATENT = 20
HEAD_PAD = 256     # fused mu|logvar head padded so both slices are sublane-aligned
LOGVAR_ROW = 128   # logvar occupies rows 128:128+LATENT of the padded head


def vae_target_kernel(
    xT_ref, epsT_ref,                 # streamed:  (D, TB), (L, TB)
    w1_ref, b1_ref,                   # resident:  (H, D),  (H, 1)
    w2_ref, b2_ref,                   # resident:  (HEAD_PAD, H), (HEAD_PAD, 1)  fused fc21|fc22 (padded)
    w3_ref, b3_ref,                   # resident:  (H, L),  (H, 1)
    w4_ref, b4_ref,                   # resident:  (1, H),  (1, 1)  pre-sliced fc4 target column
    out_ref,                          # (1, TB)  lane-dense
    *,
    latent: int,
    logvar_row: int,
):
    xT = xT_ref[...]                                                   # (D, TB)

    # encode: h1 = relu(W1 @ x^T + b1)
    h1 = jnp.dot(w1_ref[...], xT, preferred_element_type=jnp.float32) + b1_ref[...]
    h1 = jnp.maximum(h1, 0.0)                                          # (H, TB)

    # fused mu/logvar head: one matmul, sublane-aligned static slices
    h2 = jnp.dot(w2_ref[...], h1, preferred_element_type=jnp.float32) + b2_ref[...]
    mu = h2[:latent, :]                                                # (L, TB)
    logvar = h2[logvar_row:logvar_row + latent, :]                     # (L, TB)

    # reparameterize: z = mu + eps * exp(0.5 * logvar)
    z = mu + epsT_ref[...] * jnp.exp(0.5 * logvar)                     # (L, TB)

    # decode: h3 = relu(W3 @ z + b3); out = w4_row @ h3 + b4   (lane-dense row)
    h3 = jnp.dot(w3_ref[...], z, preferred_element_type=jnp.float32) + b3_ref[...]
    h3 = jnp.maximum(h3, 0.0)                                          # (H, TB)
    out_ref[...] = (
        jnp.dot(w4_ref[...], h3, preferred_element_type=jnp.float32) + b4_ref[...]
    )                                                                  # (1, TB)


def _pick_batch_tile(B: int) -> int:
    # Even 2-step grid when each half is >=128 rows (keeps both TensorCores
    # busy on v7x); otherwise a single full-batch step (no pipeline
    # prologue/epilogue on single-TC v5e/v6e).  Always divides B exactly.
    if B % 2 == 0 and (B // 2) % 128 == 0:
        return B // 2
    return B


def target_column_model(x, eps, params, targetcol_idx: int, *, block_b: int | None = None):
    """x: (B, input_dim) f32, eps: (B, LATENT) f32 -> (B, 1) f32."""
    B, D = x.shape
    H, L = HIDDEN, LATENT

    if block_b is None:
        tb = _pick_batch_tile(B)
    else:
        tb = block_b
        if B % tb != 0 or not (tb % 128 == 0 or tb == B):
            raise ValueError("block_b must divide B and be a multiple of 128 (or == B)")
    grid = (B // tb,)

    f32 = jnp.float32

    # --- host-side (one-time) parameter prep: transpose to (out, in) form ---
    w1T = params["w1"].T                                               # (H, D)
    b1T = params["b1"].T                                               # (H, 1)
    w3T = params["w3"].T                                               # (H, L)
    b3T = params["b3"].T                                               # (H, 1)

    # fused fc21|fc22 head, padded so mu rows start at 0 and logvar rows at 128
    w2T = jnp.zeros((HEAD_PAD, H), f32)
    w2T = w2T.at[0:L, :].set(params["w21"].T)
    w2T = w2T.at[LOGVAR_ROW:LOGVAR_ROW + L, :].set(params["w22"].T)
    b2T = jnp.zeros((HEAD_PAD, 1), f32)
    b2T = b2T.at[0:L, :].set(params["b21"].T)
    b2T = b2T.at[LOGVAR_ROW:LOGVAR_ROW + L, :].set(params["b22"].T)

    # fc4 pre-sliced to the target column, as a lane-dense row
    w4row = params["w4"][:, targetcol_idx:targetcol_idx + 1].T         # (1, H)
    b4col = params["b4"][:, targetcol_idx:targetcol_idx + 1]           # (1, 1)

    # transposed activation streams (features x batch)
    xT = x.T                                                           # (D, B)
    epsT = eps.T                                                       # (L, B)

    args = (xT, epsT, w1T, b1T, w2T, b2T, w3T, b3T, w4row, b4col)

    resident = lambda shape: pl.BlockSpec(shape, lambda i: (0, 0))     # load once, stay in VMEM
    in_specs = [
        pl.BlockSpec((D, tb), lambda i: (0, i)),                       # x^T   (streamed)
        pl.BlockSpec((L, tb), lambda i: (0, i)),                       # eps^T (streamed)
        resident((H, D)), resident((H, 1)),                            # w1, b1
        resident((HEAD_PAD, H)), resident((HEAD_PAD, 1)),              # fused head (padded)
        resident((H, L)), resident((H, 1)),                            # w3, b3
        resident((1, H)), resident((1, 1)),                            # w4 row, b4 col
    ]
    out_specs = pl.BlockSpec((1, tb), lambda i: (0, i))                # lane-dense output row

    flops = 2 * B * (D * H + HEAD_PAD * H + L * H + H)
    bytes_accessed = 4 * (
        B * D + B * L + B                                              # x, eps, out
        + H * D + H + HEAD_PAD * H + HEAD_PAD + H * L + H + H + 1      # weights / biases
    )
    cost = pl.CostEstimate(flops=flops, transcendentals=B * L, bytes_accessed=bytes_accessed)

    kern = functools.partial(vae_target_kernel, latent=L, logvar_row=LOGVAR_ROW)
    outT = pl.pallas_call(
        kern,
        out_shape=jax.ShapeDtypeStruct((1, B), f32),
        grid_spec=pltpu.PrefetchScalarGridSpec(
            num_scalar_prefetch=0,
            grid=grid,
            in_specs=in_specs,
            out_specs=out_specs,
        ),
        compiler_params=pltpu.CompilerParams(
            dimension_semantics=("parallel",),                         # 2 TCs on v7x
        ),
        cost_estimate=cost,
    )(*args)

    return outT.reshape(B, 1)


def init_vae_params(key, input_dim: int, hidden: int = HIDDEN, latent: int = LATENT):
    """Deterministic synthetic init; weights stored as [in, out], biases [1, out]."""
    ks = jax.random.split(key, 10)

    def lin(kw, kb, fan_in, fan_out):
        bound = 1.0 / jnp.sqrt(fan_in)
        w = jax.random.uniform(kw, (fan_in, fan_out), jnp.float32, -bound, bound)
        b = jax.random.uniform(kb, (1, fan_out), jnp.float32, -bound, bound)
        return w, b

    w1, b1 = lin(ks[0], ks[1], input_dim, hidden)
    w21, b21 = lin(ks[2], ks[3], hidden, latent)
    w22, b22 = lin(ks[4], ks[5], hidden, latent)
    w3, b3 = lin(ks[6], ks[7], latent, hidden)
    w4, b4 = lin(ks[8], ks[9], hidden, input_dim)
    return dict(w1=w1, b1=b1, w21=w21, b21=b21, w22=w22, b22=b22,
                w3=w3, b3=b3, w4=w4, b4=b4)


if __name__ == "__main__":
    B = 256          # splits into an even 2-step grid of 128-row tiles
    INPUT_DIM = 32   # number of sensor columns
    TARGET_IDX = 5   # targetcol_idx = data.columns.get_loc('pr_cyl_max__0')

    root = jax.random.PRNGKey(0)
    k_params, k_x, k_eps = jax.random.split(root, 3)

    params = init_vae_params(k_params, INPUT_DIM)
    x = jax.random.normal(k_x, (B, INPUT_DIM), jnp.float32)
    # TODO(synk): torch.randn_like(std) is drawn host-side and passed in so the
    # kernel is deterministic given its inputs.
    eps = jax.random.normal(k_eps, (B, LATENT), jnp.float32)

    out = target_column_model(x, eps, params, TARGET_IDX)
    jax.block_until_ready(out)

    # Pure-JAX reference (same math, same eps)
    h1 = jnp.maximum(x @ params["w1"] + params["b1"], 0.0)
    mu = h1 @ params["w21"] + params["b21"]
    logvar = h1 @ params["w22"] + params["b22"]
    z = mu + eps * jnp.exp(0.5 * logvar)
    h3 = jnp.maximum(z @ params["w3"] + params["b3"], 0.0)
    recon = h3 @ params["w4"] + params["b4"]
    ref = recon[:, TARGET_IDX:TARGET_IDX + 1]

    assert out.shape == (B, 1)
    assert jnp.allclose(out, ref, atol=1e-4, rtol=1e-4)

    print("KERNEL_OK")
</pallas_src>

<mosaic_0001>
module attributes {stable_mosaic.version = 11 : i64} {
  func.func @vae_target_kernel(%arg0: i32, %arg1: memref<32x128xf32, #tpu.memory_space<vmem>>, %arg2: memref<20x128xf32, #tpu.memory_space<vmem>>, %arg3: memref<400x32xf32, #tpu.memory_space<vmem>>, %arg4: memref<400x1xf32, #tpu.memory_space<vmem>>, %arg5: memref<256x400xf32, #tpu.memory_space<vmem>>, %arg6: memref<256x1xf32, #tpu.memory_space<vmem>>, %arg7: memref<400x20xf32, #tpu.memory_space<vmem>>, %arg8: memref<400x1xf32, #tpu.memory_space<vmem>>, %arg9: memref<1x400xf32, #tpu.memory_space<vmem>>, %arg10: memref<1x1xf32, #tpu.memory_space<vmem>>, %arg11: memref<1x128xf32, #tpu.memory_space<vmem>>) attributes {dimension_semantics = [#tpu.dimension_semantics<parallel>], iteration_bounds = array<i64: 2>, scalar_prefetch = 0 : i64, scratch_operands = 0 : i64, tpu.core_type = #tpu.core_type<tc>, window_params = [{transform_indices = @transform_0, window_bounds = array<i64: 32, 128>}, {transform_indices = @transform_1, window_bounds = array<i64: 20, 128>}, {pipeline_mode = #tpu.pipeline_mode<synchronous>, transform_indices = @transform_2, window_bounds = array<i64: 400, 32>}, {pipeline_mode = #tpu.pipeline_mode<synchronous>, transform_indices = @transform_3, window_bounds = array<i64: 400, 1>}, {pipeline_mode = #tpu.pipeline_mode<synchronous>, transform_indices = @transform_4, window_bounds = array<i64: 256, 400>}, {pipeline_mode = #tpu.pipeline_mode<synchronous>, transform_indices = @transform_5, window_bounds = array<i64: 256, 1>}, {pipeline_mode = #tpu.pipeline_mode<synchronous>, transform_indices = @transform_6, window_bounds = array<i64: 400, 20>}, {pipeline_mode = #tpu.pipeline_mode<synchronous>, transform_indices = @transform_7, window_bounds = array<i64: 400, 1>}, {pipeline_mode = #tpu.pipeline_mode<synchronous>, transform_indices = @transform_8, window_bounds = array<i64: 1, 400>}, {pipeline_mode = #tpu.pipeline_mode<synchronous>, transform_indices = @transform_9, window_bounds = array<i64: 1, 1>}, {transform_indices = @transform_10, window_bounds = array<i64: 1, 128>}]} {
    %c0 = arith.constant 0 : index
    %c0_0 = arith.constant 0 : index
    %0 = vector.load %arg1[%c0, %c0_0] : memref<32x128xf32, #tpu.memory_space<vmem>>, vector<32x128xf32>
    %c0_1 = arith.constant 0 : index
    %c0_2 = arith.constant 0 : index
    %1 = vector.load %arg3[%c0_1, %c0_2] : memref<400x32xf32, #tpu.memory_space<vmem>>, vector<400x32xf32>
    %cst = arith.constant dense<0.000000e+00> : vector<400x128xf32>
    %2 = tpu.matmul %1, %0, %cst {dimension_numbers = #tpu.dot_dimension_numbers<[1], [0], [0], [1], [0, 0, 1, 1], [], []>} : vector<400x32xf32>, vector<32x128xf32>, vector<400x128xf32> -> vector<400x128xf32>
    %c0_3 = arith.constant 0 : index
    %c0_4 = arith.constant 0 : index
    %3 = vector.load %arg4[%c0_3, %c0_4] : memref<400x1xf32, #tpu.memory_space<vmem>>, vector<400x1xf32>
    %4 = vector.broadcast %3 : vector<400x1xf32> to vector<400x128xf32>
    %5 = arith.addf %2, %4 : vector<400x128xf32>
    %cst_5 = arith.constant 0.000000e+00 : f32
    %6 = vector.broadcast %cst_5 : f32 to vector<400x128xf32>
    %7 = arith.maximumf %5, %6 : vector<400x128xf32>
    %c0_6 = arith.constant 0 : index
    %c0_7 = arith.constant 0 : index
    %8 = vector.load %arg5[%c0_6, %c0_7] : memref<256x400xf32, #tpu.memory_space<vmem>>, vector<256x400xf32>
    %cst_8 = arith.constant dense<0.000000e+00> : vector<256x128xf32>
    %9 = tpu.matmul %8, %7, %cst_8 {dimension_numbers = #tpu.dot_dimension_numbers<[1], [0], [0], [1], [0, 0, 1, 1], [], []>} : vector<256x400xf32>, vector<400x128xf32>, vector<256x128xf32> -> vector<256x128xf32>
    %c0_9 = arith.constant 0 : index
    %c0_10 = arith.constant 0 : index
    %10 = vector.load %arg6[%c0_9, %c0_10] : memref<256x1xf32, #tpu.memory_space<vmem>>, vector<256x1xf32>
    %11 = vector.broadcast %10 : vector<256x1xf32> to vector<256x128xf32>
    %12 = arith.addf %9, %11 : vector<256x128xf32>
    %13 = vector.extract_strided_slice %12 {offsets = [0, 0], sizes = [20, 128], strides = [1, 1]} : vector<256x128xf32> to vector<20x128xf32>
    %14 = vector.extract_strided_slice %12 {offsets = [128, 0], sizes = [20, 128], strides = [1, 1]} : vector<256x128xf32> to vector<20x128xf32>
    %c0_11 = arith.constant 0 : index
    %c0_12 = arith.constant 0 : index
    %15 = vector.load %arg2[%c0_11, %c0_12] : memref<20x128xf32, #tpu.memory_space<vmem>>, vector<20x128xf32>
    %cst_13 = arith.constant 5.000000e-01 : f32
    %16 = vector.broadcast %cst_13 : f32 to vector<20x128xf32>
    %17 = arith.mulf %16, %14 : vector<20x128xf32>
    %18 = math.exp %17 : vector<20x128xf32>
    %19 = arith.mulf %15, %18 : vector<20x128xf32>
    %20 = arith.addf %13, %19 : vector<20x128xf32>
    %c0_14 = arith.constant 0 : index
    %c0_15 = arith.constant 0 : index
    %21 = vector.load %arg7[%c0_14, %c0_15] : memref<400x20xf32, #tpu.memory_space<vmem>>, vector<400x20xf32>
    %cst_16 = arith.constant dense<0.000000e+00> : vector<400x128xf32>
    %22 = tpu.matmul %21, %20, %cst_16 {dimension_numbers = #tpu.dot_dimension_numbers<[1], [0], [0], [1], [0, 0, 1, 1], [], []>} : vector<400x20xf32>, vector<20x128xf32>, vector<400x128xf32> -> vector<400x128xf32>
    %c0_17 = arith.constant 0 : index
    %c0_18 = arith.constant 0 : index
    %23 = vector.load %arg8[%c0_17, %c0_18] : memref<400x1xf32, #tpu.memory_space<vmem>>, vector<400x1xf32>
    %24 = vector.broadcast %23 : vector<400x1xf32> to vector<400x128xf32>
    %25 = arith.addf %22, %24 : vector<400x128xf32>
    %cst_19 = arith.constant 0.000000e+00 : f32
    %26 = vector.broadcast %cst_19 : f32 to vector<400x128xf32>
    %27 = arith.maximumf %25, %26 : vector<400x128xf32>
    %c0_20 = arith.constant 0 : index
    %c0_21 = arith.constant 0 : index
    %28 = vector.load %arg9[%c0_20, %c0_21] : memref<1x400xf32, #tpu.memory_space<vmem>>, vector<1x400xf32>
    %cst_22 = arith.constant dense<0.000000e+00> : vector<1x128xf32>
    %29 = tpu.matmul %28, %27, %cst_22 {dimension_numbers = #tpu.dot_dimension_numbers<[1], [0], [0], [1], [0, 0, 1, 1], [], []>} : vector<1x400xf32>, vector<400x128xf32>, vector<1x128xf32> -> vector<1x128xf32>
    %c0_23 = arith.constant 0 : index
    %c0_24 = arith.constant 0 : index
    %30 = vector.load %arg10[%c0_23, %c0_24] : memref<1x1xf32, #tpu.memory_space<vmem>>, vector<1x1xf32>
    %31 = vector.broadcast %30 : vector<1x1xf32> to vector<1x128xf32>
    %32 = arith.addf %29, %31 : vector<1x128xf32>
    %c0_25 = arith.constant 0 : index
    %c0_26 = arith.constant 0 : index
    %33 = vector.load %arg11[%c0_25, %c0_26] : memref<1x128xf32, #tpu.memory_space<vmem>>, vector<1x128xf32>
    tpu.vector_store %arg11[%c0_25, %c0_26], %32 {strides = array<i32>} : memref<1x128xf32, #tpu.memory_space<vmem>>, vector<1x128xf32>,
    return
  }
  func.func @transform_0(%arg0: i32) -> (i32, i32) {
    %c0_i32 = arith.constant 0 : i32
    %c0_i32_0 = arith.constant 0 : i32
    return %c0_i32, %arg0 : i32, i32
  }
  func.func @transform_1(%arg0: i32) -> (i32, i32) {
    %c0_i32 = arith.constant 0 : i32
    %c0_i32_0 = arith.constant 0 : i32
    return %c0_i32, %arg0 : i32, i32
  }
  func.func @transform_2(%arg0: i32) -> (i32, i32) {
    %c0_i32 = arith.constant 0 : i32
    %c0_i32_0 = arith.constant 0 : i32
    %c0_i32_1 = arith.constant 0 : i32
    return %c0_i32, %c0_i32_0 : i32, i32
  }
  func.func @transform_3(%arg0: i32) -> (i32, i32) {
    %c0_i32 = arith.constant 0 : i32
    %c0_i32_0 = arith.constant 0 : i32
    %c0_i32_1 = arith.constant 0 : i32
    return %c0_i32, %c0_i32_0 : i32, i32
  }
  func.func @transform_4(%arg0: i32) -> (i32, i32) {
    %c0_i32 = arith.constant 0 : i32
    %c0_i32_0 = arith.constant 0 : i32
    %c0_i32_1 = arith.constant 0 : i32
    return %c0_i32, %c0_i32_0 : i32, i32
  }
  func.func @transform_5(%arg0: i32) -> (i32, i32) {
    %c0_i32 = arith.constant 0 : i32
    %c0_i32_0 = arith.constant 0 : i32
    %c0_i32_1 = arith.constant 0 : i32
    return %c0_i32, %c0_i32_0 : i32, i32
  }
  func.func @transform_6(%arg0: i32) -> (i32, i32) {
    %c0_i32 = arith.constant 0 : i32
    %c0_i32_0 = arith.constant 0 : i32
    %c0_i32_1 = arith.constant 0 : i32
    return %c0_i32, %c0_i32_0 : i32, i32
  }
  func.func @transform_7(%arg0: i32) -> (i32, i32) {
    %c0_i32 = arith.constant 0 : i32
    %c0_i32_0 = arith.constant 0 : i32
    %c0_i32_1 = arith.constant 0 : i32
    return %c0_i32, %c0_i32_0 : i32, i32
  }
  func.func @transform_8(%arg0: i32) -> (i32, i32) {
    %c0_i32 = arith.constant 0 : i32
    %c0_i32_0 = arith.constant 0 : i32
    %c0_i32_1 = arith.constant 0 : i32
    return %c0_i32, %c0_i32_0 : i32, i32
  }
  func.func @transform_9(%arg0: i32) -> (i32, i32) {
    %c0_i32 = arith.constant 0 : i32
    %c0_i32_0 = arith.constant 0 : i32
    %c0_i32_1 = arith.constant 0 : i32
    return %c0_i32, %c0_i32_0 : i32, i32
  }
  func.func @transform_10(%arg0: i32) -> (i32, i32) {
    %c0_i32 = arith.constant 0 : i32
    %c0_i32_0 = arith.constant 0 : i32
    return %c0_i32, %arg0 : i32, i32
  }
}

</mosaic_0001>

<bundles_post_ra>
// kernel: tpu_custom_call.1
= control target key start
LH: loop header
LB: loop body
LE: loop exit
PB: predicated region body
PF: predicated region fallthrough
CT: control target
= control target key end

     0   :  { %s5575_s0 = inlined_call_operand.vmem [shape: f32[32,256], index: 0, kind: input, shape index: {}]   ;;  %s5576_s1 = inlined_call_operand.vmem [shape: f32[20,256], index: 1, kind: input, shape index: {}]   ;;  %s5577_s2 = inlined_call_operand.vmem [shape: f32[400,32], index: 2, kind: input, shape index: {}]   ;;  %s5578_s3 = inlined_call_operand.vmem [shape: f32[400,1], index: 3, kind: input, shape index: {}]   ;;  %s5579_s4 = inlined_call_operand.vmem [shape: f32[256,400], index: 4, kind: input, shape index: {}]   ;;  %s5580_s5 = inlined_call_operand.vmem [shape: f32[256,1], index: 5, kind: input, shape index: {}]   ;;  %s5581_s6 = inlined_call_operand.vmem [shape: f32[400,20], index: 6, kind: input, shape index: {}]   ;;  %s5582_s7 = inlined_call_operand.vmem [shape: f32[400,1], index: 7, kind: input, shape index: {}]   ;;  %s5583_s8 = inlined_call_operand.vmem [shape: f32[1,400], index: 8, kind: input, shape index: {}]   ;;  %s5584_s9 = inlined_call_operand.<no memory space> [shape: f32[1,1], index: 9, kind: input, shape index: {}]   ;;  %s5585_s10 = inlined_call_operand.hbm [shape: f32[1,256], index: 10, kind: output, shape index: {}]  }
   0x1   :  { %v15_v0 = vstv %s5584_s9 }
   0x2   :  { %16 = vst [vmem:[#allocation2] sm:$0x1] %v15_v0 }
   0x3   :  { %17 = vsyncpa [#allocation6], 0 }
   0x4   :  { %19 = vsyncpa [#allocation6 + $0x1], 0  ;;  %s4094_s15 = smov 0   ;;  %s4096_s16 = smov 0  }
   0x5   :  { %s4098_s17 = smov 0   ;;  %s4100_s18 = smov 0  }
   0x6 LB: > { %s3279_s9 = sadd.s32 4294967295, %s4031_s18   ;;  %s3280_s19 = sadd.s32 4294967294, %s4031_s18   ;;  %s4031_s18 = sphi %s4100_s18, %s5592_s18   ;;  %s4027_s17 = sphi %s4098_s17, %s5591_s17   ;;  %s4023_s16 = sphi %s4096_s16, %s5590_s16   ;;  %s4019_s15 = sphi %s4094_s15, %s5589_s15  }
   0x7   : > { %s4117_s20 = sadd.s32 1, %s4031_s18   ;;  %s32_s21 = sadd.s32 1, %s4027_s17 }
   0x8   : > { %s29_s22 = ssub.s32 %s4031_s18, %s4117_s20  ;;  %p39_p0 = scmp.ne.s32.totalorder %s4027_s17, %s4023_s16 }
   0x9   : > { %p30_p1 = scmp.eq.s32.totalorder %s29_s22, 0  ;;  %p40_p2 = scmp.eq.s32.totalorder %s4031_s18, 0 }
   0xa   : > { %p263_p3 = scmp.eq.s32.totalorder %s3279_s9, 1  ;;  %p268_p4 = scmp.ne.s32.totalorder %s4023_s16, %s4019_s15 }
   0xb   : > { %s4130_s23 = scalar_select %p30_p1, %s4027_s17, %s32_s21  }
   0xc   : > { %p4132_p5 = por %p40_p2, %p39_p0  ;;  %p4136_p6 = por %p263_p3, %p39_p0 }
   0xd   : > { %p269_p7 = scmp.eq.s32.totalorder %s3280_s19, 1  ;;  %p3282_p9 = scmp.ge.s32.totalorder %s4031_s18, 2 }
   0xf   : > { %p4140_p8 = por %p269_p7, %p268_p4  ;;  %309 = sbr.rel (%p3282_p9) target bundleno = 36 (0x24), region = 48 }
  0x16   : > { %312 = sbr.rel (!%p4132_p5) target bundleno = 29 (0x1d), region = 52  ;;  %s314_s27 = sand.u32 (%p4132_p5), 1, %s4027_s17  }
  0x17   : > { %s3284_s28 = sshll.u32 (%p4132_p5), %s4031_s18, 3  ;;  %s3283_s29 = sshll.u32 (%p4132_p5), %s314_s27, 5 }
  0x18   : > { %s318_s12 = scalar_lea.vmem (%p4132_p5), %s5575_s0, %s3284_s28  ;;  %s316_s13 = scalar_lea.vmem (%p4132_p5), [#allocation3], %s3283_s29 }
  0x19   : > { %v352_v1 = vld [vmem:[%s318_s12] sm:$0xff] (%p4132_p5)  ;;  %v354_v2 = vld [vmem:[%s318_s12 + $0x10] sm:$0xff] (%p4132_p5) }
  0x1a   : > { %v356_v3 = vld [vmem:[%s318_s12 + $0x20] sm:$0xff] (%p4132_p5)  ;;  %353 = vst [vmem:[%s316_s13] sm:$0xff] (%p4132_p5), %v352_v1  ;;  %355 = vst [vmem:[%s316_s13 + $0x8] sm:$0xff] (%p4132_p5), %v354_v2  ;;  %v358_v4 = vld [vmem:[%s318_s12 + $0x30] sm:$0xff] (%p4132_p5) }
  0x1b   : > { %357 = vst [vmem:[%s316_s13 + $0x10] sm:$0xff] (%p4132_p5), %v356_v3  ;;  %359 = vst [vmem:[%s316_s13 + $0x18] sm:$0xff] (%p4132_p5), %v358_v4 }
  0x1d PF: > { %365 = sbr.rel (!%p4132_p5) target bundleno = 36 (0x24), region = 90  ;;  %s367_s14 = sand.u32 (%p4132_p5), 1, %s4027_s17  }
  0x1e   : > { %s3285_s19 = sshll.u32 (%p4132_p5), %s4031_s18, 3  ;;  %s3918_s21 = smul.u32 (%p4132_p5), 24, %s367_s14 }
  0x1f   : > { %s371_s28 = scalar_lea.vmem (%p4132_p5), %s5576_s1, %s3285_s19 }
  0x20   : > { %v403_v5 = vld [vmem:[%s371_s28] sm:$0xff] (%p4132_p5)  ;;  %v405_v6 = vld [vmem:[%s371_s28 + $0x10] sm:$0xff] (%p4132_p5)  ;;  %s369_s29 = scalar_lea.vmem (%p4132_p5), [#allocation4], %s3918_s21 }
  0x21   : > { %v407_v7 = vld [vmem:[%s371_s28 + $0x20] sm:$0xff] (%p4132_p5)  ;;  %404 = vst [vmem:[%s369_s29] sm:$0xff] (%p4132_p5), %v403_v5  ;;  %406 = vst [vmem:[%s369_s29 + $0x8] sm:$0xff] (%p4132_p5), %v405_v6 }
  0x22   : > { %408 = vst [vmem:[%s369_s29 + $0x10] sm:$0xff] (%p4132_p5), %v407_v7 }
  0x24 PF: > { %p3286_p10 = scmp.ge.s32.totalorder %s4031_s18, 1  ;;  %p413_p11 = scmp.lt.s32.totalorder %s4031_s18, 3 }
  0x26   : > { %p414_p12 = pnand %p3286_p10, %p413_p11 }
  0x27   : > { %v523_v8 = vld [vmem:[%s5578_s3 + $0x10] sm:$0xff] (!%p414_p12)  ;;  %v521_v9 = vld [vmem:[%s5578_s3] sm:$0xff] (!%p414_p12)  ;;  %s4170_s13 = sand.u32 (!%p414_p12), 1, %s4023_s16   ;;  %vm821_vm0 = vcmask (!%p414_p12), 261120   ;;  %v4033_v10 = vmov (!%p414_p12), 0   ;;  %v524_v11 = vld [vmem:[%s5578_s3 + $0x18] sm:$0xff] (!%p414_p12) }
  0x28   : > { %417 = sbr.rel (%p414_p12) target bundleno = 1284 (0x504), region = 128  ;;  %3962 = vset.pattern.permute.xlu1 (!%p414_p12), %v4033_v10  ;;  %3961 = vset.pattern.permute.xlu0 (!%p414_p12), %v4033_v10  ;;  %s3287_s14 = sshll.u32 (!%p414_p12), %s4170_s13, 5  ;;  %v522_v12 = vld [vmem:[%s5578_s3 + $0x8] sm:$0xff] (!%p414_p12)  ;;  %v471_v13 = vld [vmem:[%s5577_s2] sm:$0xff] (!%p414_p12)  ;;  %v528_v22 = vld [vmem:[%s5578_s3 + $0x38] sm:$0xff] (!%p414_p12)  ;;  %vm1631_vm1 = vcmask (!%p414_p12), 130048  }
  0x29   : > { %583 = vperm.xlu1 (!%p414_p12), %3962, %v523_v8   ;;  %573 = vperm.xlu0 (!%p414_p12), %3961, %v521_v9   ;;  %s422_s24 = scalar_lea.vmem (!%p414_p12), [#allocation3], %s3287_s14  ;;  %v526_v20 = vld [vmem:[%s5578_s3 + $0x28] sm:$0xff] (!%p414_p12)  ;;  %v525_v21 = vld [vmem:[%s5578_s3 + $0x20] sm:$0xff] (!%p414_p12)  ;;  %v527_v23 = vld [vmem:[%s5578_s3 + $0x30] sm:$0xff] (!%p414_p12)  ;;  %vm2494_vm2 = vcmask (!%p414_p12), 162816   ;;  %s3919_s12 = smul.u32 (!%p414_p12), 24, %s4170_s13 }
  0x2a   : > { %v467_v14 = vld [vmem:[%s422_s24] sm:$0xff] (!%p414_p12)  ;;  %v468_v15 = vld [vmem:[%s422_s24 + $0x8] sm:$0xff] (!%p414_p12)  ;;  %v469_v16 = vld [vmem:[%s422_s24 + $0x10] sm:$0xff] (!%p414_p12)  ;;  %3575 = vmatprep.mubr.msk.f32.mxu0 (!%p414_p12), %vm821_vm0, %v471_v13  ;;  %vm2645_vm3 = vcmask (!%p414_p12), 1043456   ;;  %s3189_s28 = scalar_lea.sflag (!%p414_p12), [#allocation6], %s4170_s13 }
  0x2b   : > { %v3731_v17 = vpack.c.bf16 (!%p414_p12), %v468_v15, %v467_v14  ;;  %v470_v18 = vld [vmem:[%s422_s24 + $0x18] sm:$0xff] (!%p414_p12)  ;;  %v472_v24 = vld [vmem:[%s5577_s2 + $0x8] sm:$0xff] (!%p414_p12)  ;;  %v473_v25 = vld [vmem:[%s5577_s2 + $0x10] sm:$0xff] (!%p414_p12)  ;;  %s429_s19 = scalar_lea.vmem (!%p414_p12), [#allocation4], %s3919_s12  ;;  %s3422_s12 = sshll.u32 (!%p414_p12), %s3279_s9, 4 }
  0x2c   : > { %v3735_v19 = vpack.c.bf16 (!%p414_p12), %v470_v18, %v469_v16  ;;  %v530_v26 = vld [vmem:[%s5578_s3 + $0x48] sm:$0xff] (!%p414_p12)  ;;  %v529_v27 = vld [vmem:[%s5578_s3 + $0x40] sm:$0xff] (!%p414_p12)  ;;  %v474_v28 = vld [vmem:[%s5577_s2 + $0x18] sm:$0xff] (!%p414_p12)  ;;  %s5531_s27 = scalar_lea.hbm (!%p414_p12), %s5585_s10, %s3422_s12  ;;  %s4035_s9 = smov (!%p414_p12), [#allocation5]  }
  0x2d   : > { %588 = vperm.xlu1 (!%p414_p12), %3962, %v524_v11   ;;  %578 = vperm.xlu0 (!%p414_p12), %3961, %v522_v12   ;;  %v475_v29 = vld [vmem:[%s5577_s2 + $0x20] sm:$0xff] (!%p414_p12)  ;;  %v532_v30 = vld [vmem:[%s5578_s3 + $0x58] sm:$0xff] (!%p414_p12)  ;;  %v531_v31 = vld [vmem:[%s5578_s3 + $0x50] sm:$0xff] (!%p414_p12)  ;;  %s3973_s24 = sshll.u32 (!%p414_p12), %s4035_s9, 4  ;;  %s3974_s24 = int_to_ptr.vmem [resolvable:$false] %s3973_s24 }
  0x2e   : > { %3732 = vmatprep.subr.bf16.mxu0 (!%p414_p12), %v3731_v17  ;;  %v476_v32 = vld [vmem:[%s5577_s2 + $0x28] sm:$0xff] (!%p414_p12)  ;;  %v477_v33 = vld [vmem:[%s5577_s2 + $0x30] sm:$0xff] (!%p414_p12)  ;;  %v533_v35 = vld [vmem:[%s5578_s3 + $0x60] sm:$0xff] (!%p414_p12)  ;;  %s3975_s30 = scalar_lea.vmem (!%p414_p12), %s3974_s24, 32 }
  0x2f   : > { %3734 = vmatpush3.bf16.msra.mxu0 %v3731_v17  ;;  %v534_v34 = vld [vmem:[%s5578_s3 + $0x68] sm:$0xff]  ;;  %v478_v36 = vld [vmem:[%s5577_s2 + $0x38] sm:$0xff]  ;;  %v479_v37 = vld [vmem:[%s5577_s2 + $0x40] sm:$0xff] }
  0x30   : > { %3736 = vmatprep.subr.bf16.mxu0 %v3735_v19  ;;  %v536_v38 = vld [vmem:[%s5578_s3 + $0x78] sm:$0xff]  ;;  %v535_v39 = vld [vmem:[%s5578_s3 + $0x70] sm:$0xff]  ;;  %v480_v40 = vld [vmem:[%s5577_s2 + $0x48] sm:$0xff] }
  0x31   : > { %598 = vperm.xlu1 %3962, %v526_v20   ;;  %593 = vperm.xlu0 %3961, %v525_v21   ;;  %v481_v41 = vld [vmem:[%s5577_s2 + $0x50] sm:$0xff]  ;;  %v538_v42 = vld [vmem:[%s5578_s3 + $0x88] sm:$0xff]  ;;  %v537_v43 = vld [vmem:[%s5578_s3 + $0x80] sm:$0xff] }
  0x32   : > { %v482_v44 = vld [vmem:[%s5577_s2 + $0x58] sm:$0xff]  ;;  %v483_v45 = vld [vmem:[%s5577_s2 + $0x60] sm:$0xff]  ;;  %v539_v47 = vld [vmem:[%s5578_s3 + $0x90] sm:$0xff] }
  0x33   : > { %3738 = vmatpush3.bf16.msra.mxu0 %v3735_v19  ;;  %v540_v46 = vld [vmem:[%s5578_s3 + $0x98] sm:$0xff]  ;;  %v484_v48 = vld [vmem:[%s5577_s2 + $0x68] sm:$0xff]  ;;  %v485_v49 = vld [vmem:[%s5577_s2 + $0x70] sm:$0xff] }
  0x34   : > { %v542_v50 = vld [vmem:[%s5578_s3 + $0xa8] sm:$0xff]  ;;  %v541_v51 = vld [vmem:[%s5578_s3 + $0xa0] sm:$0xff]  ;;  %v486_v52 = vld [vmem:[%s5577_s2 + $0x78] sm:$0xff] }
  0x35   : > { %608 = vperm.xlu1 %3962, %v528_v22   ;;  %603 = vperm.xlu0 %3961, %v527_v23   ;;  %v487_v53 = vld [vmem:[%s5577_s2 + $0x80] sm:$0xff]  ;;  %v544_v54 = vld [vmem:[%s5578_s3 + $0xb8] sm:$0xff]  ;;  %v543_v55 = vld [vmem:[%s5578_s3 + $0xb0] sm:$0xff] }
  0x36   : > { %3576 = vmatmul.mubr.msk.f32.vlgmr.msra.gmra.mrb[0].mxu0 %vm821_vm0, %v472_v24  ;;  %v488_v56 = vld [vmem:[%s5577_s2 + $0x88] sm:$0xff]  ;;  %v489_v57 = vld [vmem:[%s5577_s2 + $0x90] sm:$0xff]  ;;  %v545_v59 = vld [vmem:[%s5578_s3 + $0xc0] sm:$0xff] }
  0x37   : > { %3578 = vmatprep.mubr.msk.f32.mxu0 %vm821_vm0, %v473_v25  ;;  %v546_v58 = vld [vmem:[%s5578_s3 + $0xc8] sm:$0xff]  ;;  %v490_v60 = vld [vmem:[%s5577_s2 + $0x98] sm:$0xff]  ;;  %v491_v61 = vld [vmem:[%s5577_s2 + $0xa0] sm:$0xff] }
  0x38   : > { %v548_v62 = vld [vmem:[%s5578_s3 + $0xd8] sm:$0xff]  ;;  %v547_v63 = vld [vmem:[%s5578_s3 + $0xd0] sm:$0xff]  ;;  %v492_v0 = vld [vmem:[%s5577_s2 + $0xa8] sm:$0xff] }
  0x39   : > { %618 = vperm.xlu1 %3962, %v530_v26   ;;  %613 = vperm.xlu0 %3961, %v529_v27   ;;  %v493_v1 = vld [vmem:[%s5577_s2 + $0xb0] sm:$0xff]  ;;  %v550_v2 = vld [vmem:[%s5578_s3 + $0xe8] sm:$0xff]  ;;  %v549_v3 = vld [vmem:[%s5578_s3 + $0xe0] sm:$0xff] }
  0x3a   : > { %3579 = vmatmul.mubr.msk.f32.gmra.mrb[2].mxu0 %vm821_vm0, %v474_v28  ;;  %v494_v4 = vld [vmem:[%s5577_s2 + $0xb8] sm:$0xff]  ;;  %v495_v5 = vld [vmem:[%s5577_s2 + $0xc0] sm:$0xff]  ;;  %v551_v7 = vld [vmem:[%s5578_s3 + $0xf0] sm:$0xff] }
  0x3b   : > { %3581 = vmatprep.mubr.msk.f32.mxu0 %vm821_vm0, %v475_v29  ;;  %v552_v6 = vld [vmem:[%s5578_s3 + $0xf8] sm:$0xff]  ;;  %v496_v8 = vld [vmem:[%s5577_s2 + $0xc8] sm:$0xff]  ;;  %v497_v9 = vld [vmem:[%s5577_s2 + $0xd0] sm:$0xff] }
  0x3c   : > { %v554_v10 = vld [vmem:[%s5578_s3 + $0x108] sm:$0xff]  ;;  %v553_v11 = vld [vmem:[%s5578_s3 + $0x100] sm:$0xff]  ;;  %v498_v12 = vld [vmem:[%s5577_s2 + $0xd8] sm:$0xff] }
  0x3d   : > { %628 = vperm.xlu1 %3962, %v532_v30   ;;  %623 = vperm.xlu0 %3961, %v531_v31   ;;  %v499_v13 = vld [vmem:[%s5577_s2 + $0xe0] sm:$0xff]  ;;  %v556_v14 = vld [vmem:[%s5578_s3 + $0x118] sm:$0xff]  ;;  %v555_v15 = vld [vmem:[%s5578_s3 + $0x110] sm:$0xff] }
  0x3e   : > { %3582 = vmatmul.mubr.msk.f32.gmra.mrb[4].mxu0 %vm821_vm0, %v476_v32  ;;  %v500_v16 = vld [vmem:[%s5577_s2 + $0xe8] sm:$0xff]  ;;  %v501_v17 = vld [vmem:[%s5577_s2 + $0xf0] sm:$0xff]  ;;  %v557_v19 = vld [vmem:[%s5578_s3 + $0x120] sm:$0xff] }
  0x3f   : > { %3584 = vmatprep.mubr.msk.f32.mxu0 %vm821_vm0, %v477_v33  ;;  %v558_v18 = vld [vmem:[%s5578_s3 + $0x128] sm:$0xff]  ;;  %v502_v20 = vld [vmem:[%s5577_s2 + $0xf8] sm:$0xff]  ;;  %v503_v21 = vld [vmem:[%s5577_s2 + $0x100] sm:$0xff] }
  0x40   : > { %v560_v22 = vld [vmem:[%s5578_s3 + $0x138] sm:$0xff]  ;;  %v559_v23 = vld [vmem:[%s5578_s3 + $0x130] sm:$0xff]  ;;  %v504_v24 = vld [vmem:[%s5577_s2 + $0x108] sm:$0xff] }
  0x41   : > { %638 = vperm.xlu1 %3962, %v534_v34   ;;  %633 = vperm.xlu0 %3961, %v533_v35   ;;  %v505_v25 = vld [vmem:[%s5577_s2 + $0x110] sm:$0xff]  ;;  %v562_v26 = vld [vmem:[%s5578_s3 + $0x148] sm:$0xff]  ;;  %v561_v27 = vld [vmem:[%s5578_s3 + $0x140] sm:$0xff] }
  0x42   : > { %3585 = vmatmul.mubr.msk.f32.gmra.mrb[6].mxu0 %vm821_vm0, %v478_v36  ;;  %v506_v28 = vld [vmem:[%s5577_s2 + $0x118] sm:$0xff]  ;;  %v507_v29 = vld [vmem:[%s5577_s2 + $0x120] sm:$0xff]  ;;  %v563_v31 = vld [vmem:[%s5578_s3 + $0x150] sm:$0xff] }
  0x43   : > { %3587 = vmatprep.mubr.msk.f32.mxu0 %vm821_vm0, %v479_v37  ;;  %v564_v30 = vld [vmem:[%s5578_s3 + $0x158] sm:$0xff]  ;;  %v508_v32 = vld [vmem:[%s5577_s2 + $0x128] sm:$0xff]  ;;  %v509_v33 = vld [vmem:[%s5577_s2 + $0x130] sm:$0xff] }
  0x44   : > { %v566_v34 = vld [vmem:[%s5578_s3 + $0x168] sm:$0xff]  ;;  %v565_v35 = vld [vmem:[%s5578_s3 + $0x160] sm:$0xff]  ;;  %v510_v36 = vld [vmem:[%s5577_s2 + $0x138] sm:$0xff] }
  0x45   : > { %648 = vperm.xlu1 %3962, %v536_v38   ;;  %643 = vperm.xlu0 %3961, %v535_v39   ;;  %v511_v37 = vld [vmem:[%s5577_s2 + $0x140] sm:$0xff]  ;;  %v568_v38 = vld [vmem:[%s5578_s3 + $0x178] sm:$0xff]  ;;  %v567_v39 = vld [vmem:[%s5578_s3 + $0x170] sm:$0xff] }
  0x46   : > { %3588 = vmatmul.mubr.msk.f32.gmra.mrb[8].mxu0 %vm821_vm0, %v480_v40  ;;  %v512_v40 = vld [vmem:[%s5577_s2 + $0x148] sm:$0xff] }
  0x47   : > { %3590 = vmatprep.mubr.msk.f32.mxu0 %vm821_vm0, %v481_v41  ;;  %v513_v41 = vld [vmem:[%s5577_s2 + $0x150] sm:$0xff] }
  0x49   : > { %658 = vperm.xlu1 %3962, %v538_v42   ;;  %653 = vperm.xlu0 %3961, %v537_v43   ;;  %v570_v42 = vld [vmem:[%s5578_s3 + $0x188] sm:$0xff]  ;;  %v569_v43 = vld [vmem:[%s5578_s3 + $0x180] sm:$0xff] }
  0x4a   : > { %3591 = vmatmul.mubr.msk.f32.gmra.mrb[10].mxu0 %vm821_vm0, %v482_v44  ;;  %v514_v44 = vld [vmem:[%s5577_s2 + $0x158] sm:$0xff] }
  0x4b   : > { %3593 = vmatprep.mubr.msk.f32.mxu0 %vm821_vm0, %v483_v45  ;;  %v515_v45 = vld [vmem:[%s5577_s2 + $0x160] sm:$0xff] }
  0x4d   : > { %668 = vperm.xlu1 %3962, %v540_v46   ;;  %663 = vperm.xlu0 %3961, %v539_v47   ;;  %v1482_v46 = vld [vmem:[%s5580_s5 + $0x88] sm:$0xff]  ;;  %v1481_v47 = vld [vmem:[%s5580_s5 + $0x80] sm:$0xff] }
  0x4e   : > { %3594 = vmatmul.mubr.msk.f32.gmra.mrb[12].mxu0 %vm821_vm0, %v484_v48  ;;  %v516_v48 = vld [vmem:[%s5577_s2 + $0x168] sm:$0xff] }
  0x4f   : > { %3596 = vmatprep.mubr.msk.f32.mxu0 %vm821_vm0, %v485_v49  ;;  %v517_v49 = vld [vmem:[%s5577_s2 + $0x170] sm:$0xff] }
  0x51   : > { %678 = vperm.xlu1 %3962, %v542_v50   ;;  %673 = vperm.xlu0 %3961, %v541_v51   ;;  %v1465_v50 = vld [vmem:[%s5580_s5] sm:$0xff]  ;;  %v1483_v51 = vld [vmem:[%s5580_s5 + $0x90] sm:$0xff] }
  0x52   : > { %3597 = vmatmul.mubr.msk.f32.gmra.mrb[14].mxu0 %vm821_vm0, %v486_v52  ;;  %v518_v52 = vld [vmem:[%s5577_s2 + $0x178] sm:$0xff] }
  0x53   : > { %3599 = vmatprep.mubr.msk.f32.mxu0 %vm821_vm0, %v487_v53  ;;  %v519_v53 = vld [vmem:[%s5577_s2 + $0x180] sm:$0xff] }
  0x55   : > { %688 = vperm.xlu1 %3962, %v544_v54   ;;  %683 = vperm.xlu0 %3961, %v543_v55   ;;  %v4034_v54 = vmov 0.0|0.0   ;;  %v1467_v55 = vld [vmem:[%s5580_s5 + $0x10] sm:$0xff] }
  0x56   : > { %3600 = vmatmul.mubr.msk.f32.gmra.mrb[16].mxu0 %vm821_vm0, %v488_v56  ;;  %3739 = vmatprep.subr.bf16.mxu0 %v4034_v54  ;;  %v1466_v56 = vld [vmem:[%s5580_s5 + $0x8] sm:$0xff] }
  0x57   : > { %3602 = vmatprep.mubr.msk.f32.mxu0 %vm821_vm0, %v489_v57  ;;  %3877 = vmatprep.subr.bf16.mxu1 %v4034_v54  ;;  %v520_v57 = vld [vmem:[%s5577_s2 + $0x188] sm:$0xff] }
  0x59   : > { %698 = vperm.xlu1 %3962, %v546_v58   ;;  %693 = vperm.xlu0 %3961, %v545_v59   ;;  %v2211_v58 = vld [vmem:[%s5582_s7 + $0x88] sm:$0xff]  ;;  %v2210_v59 = vld [vmem:[%s5582_s7 + $0x80] sm:$0xff] }
  0x5a   : > { %3603 = vmatmul.mubr.msk.f32.gmra.mrb[18].mxu0 %vm821_vm0, %v490_v60  ;;  %v2195_v60 = vld [vmem:[%s5582_s7 + $0x8] sm:$0xff] }
  0x5b   : > { %3605 = vmatprep.mubr.msk.f32.mxu0 %vm821_vm0, %v491_v61  ;;  %v2194_v61 = vld [vmem:[%s5582_s7] sm:$0xff] }
  0x5d   : > { %708 = vperm.xlu1 %3962, %v548_v62   ;;  %703 = vperm.xlu0 %3961, %v547_v63   ;;  %v2213_v62 = vld [vmem:[%s5582_s7 + $0x98] sm:$0xff]  ;;  %v2212_v63 = vld [vmem:[%s5582_s7 + $0x90] sm:$0xff] }
  0x5e   : > { %3606 = vmatmul.mubr.msk.f32.gmra.mrb[20].mxu0 %vm821_vm0, %v492_v0  ;;  %v2197_v0 = vld [vmem:[%s5582_s7 + $0x18] sm:$0xff] }
  0x5f   : > { %3608 = vmatprep.mubr.msk.f32.mxu0 %vm821_vm0, %v493_v1  ;;  %v2196_v1 = vld [vmem:[%s5582_s7 + $0x10] sm:$0xff] }
  0x61   : > { %718 = vperm.xlu1 %3962, %v550_v2   ;;  %713 = vperm.xlu0 %3961, %v549_v3   ;;  %v2215_v2 = vld [vmem:[%s5582_s7 + $0xa8] sm:$0xff]  ;;  %v2214_v3 = vld [vmem:[%s5582_s7 + $0xa0] sm:$0xff] }
  0x62   : > { %3609 = vmatmul.mubr.msk.f32.gmra.mrb[22].mxu0 %vm821_vm0, %v494_v4  ;;  %v2199_v4 = vld [vmem:[%s5582_s7 + $0x28] sm:$0xff] }
  0x63   : > { %3611 = vmatprep.mubr.msk.f32.mxu0 %vm821_vm0, %v495_v5  ;;  %v2198_v5 = vld [vmem:[%s5582_s7 + $0x20] sm:$0xff] }
  0x65   : > { %728 = vperm.xlu1 %3962, %v552_v6   ;;  %723 = vperm.xlu0 %3961, %v551_v7   ;;  %v2217_v6 = vld [vmem:[%s5582_s7 + $0xb8] sm:$0xff]  ;;  %v2216_v7 = vld [vmem:[%s5582_s7 + $0xb0] sm:$0xff] }
  0x66   : > { %3612 = vmatmul.mubr.msk.f32.gmra.mrb[24].mxu0 %vm821_vm0, %v496_v8  ;;  %v2201_v8 = vld [vmem:[%s5582_s7 + $0x38] sm:$0xff] }
  0x67   : > { %3614 = vmatprep.mubr.msk.f32.mxu0 %vm821_vm0, %v497_v9  ;;  %v2200_v9 = vld [vmem:[%s5582_s7 + $0x30] sm:$0xff] }
  0x69   : > { %738 = vperm.xlu1 %3962, %v554_v10   ;;  %733 = vperm.xlu0 %3961, %v553_v11   ;;  %v2219_v10 = vld [vmem:[%s5582_s7 + $0xc8] sm:$0xff]  ;;  %v2218_v11 = vld [vmem:[%s5582_s7 + $0xc0] sm:$0xff] }
  0x6a   : > { %3615 = vmatmul.mubr.msk.f32.gmra.mrb[26].mxu0 %vm821_vm0, %v498_v12  ;;  %v2203_v12 = vld [vmem:[%s5582_s7 + $0x48] sm:$0xff] }
  0x6b   : > { %3617 = vmatprep.mubr.msk.f32.mxu0 %vm821_vm0, %v499_v13  ;;  %v2202_v13 = vld [vmem:[%s5582_s7 + $0x40] sm:$0xff] }
  0x6d   : > { %748 = vperm.xlu1 %3962, %v556_v14   ;;  %743 = vperm.xlu0 %3961, %v555_v15   ;;  %v2221_v14 = vld [vmem:[%s5582_s7 + $0xd8] sm:$0xff]  ;;  %v2220_v15 = vld [vmem:[%s5582_s7 + $0xd0] sm:$0xff] }
  0x6e   : > { %3618 = vmatmul.mubr.msk.f32.gmra.mrb[28].mxu0 %vm821_vm0, %v500_v16  ;;  %v2205_v16 = vld [vmem:[%s5582_s7 + $0x58] sm:$0xff] }
  0x6f   : > { %3620 = vmatprep.mubr.msk.f32.mxu0 %vm821_vm0, %v501_v17  ;;  %v2204_v17 = vld [vmem:[%s5582_s7 + $0x50] sm:$0xff] }
  0x71   : > { %758 = vperm.xlu1 %3962, %v558_v18   ;;  %753 = vperm.xlu0 %3961, %v557_v19   ;;  %v2223_v18 = vld [vmem:[%s5582_s7 + $0xe8] sm:$0xff]  ;;  %v2222_v19 = vld [vmem:[%s5582_s7 + $0xe0] sm:$0xff] }
  0x72   : > { %3621 = vmatmul.mubr.msk.f32.gmra.mrb[30].mxu0 %vm821_vm0, %v502_v20  ;;  %v2207_v20 = vld [vmem:[%s5582_s7 + $0x68] sm:$0xff] }
  0x73   : > { %3623 = vmatprep.mubr.msk.f32.mxu0 %vm821_vm0, %v503_v21  ;;  %v2206_v21 = vld [vmem:[%s5582_s7 + $0x60] sm:$0xff] }
  0x75   : > { %768 = vperm.xlu1 %3962, %v560_v22   ;;  %763 = vperm.xlu0 %3961, %v559_v23   ;;  %v2225_v22 = vld [vmem:[%s5582_s7 + $0xf8] sm:$0xff]  ;;  %v2224_v23 = vld [vmem:[%s5582_s7 + $0xf0] sm:$0xff] }
  0x76   : > { %3624 = vmatmul.mubr.msk.f32.gmra.mrb[32].mxu0 %vm821_vm0, %v504_v24  ;;  %v1338_v24 = vld [vmem:[%s5579_s4 + $0x8] sm:$0xff] }
  0x77   : > { %3626 = vmatprep.mubr.msk.f32.mxu0 %vm821_vm0, %v505_v25  ;;  %v1374_v25 = vld [vmem:[%s5579_s4 + $0x128] sm:$0xff] }
  0x78   : > { %1831 = vmatprep.mubr.f32.mxu1 %v1374_v25 }
  0x79   : > { %778 = vperm.xlu1 %3962, %v562_v26   ;;  %773 = vperm.xlu0 %3961, %v561_v27   ;;  %v2209_v26 = vld [vmem:[%s5582_s7 + $0x78] sm:$0xff]  ;;  %v2208_v27 = vld [vmem:[%s5582_s7 + $0x70] sm:$0xff] }
  0x7a   : > { %3627 = vmatmul.mubr.msk.f32.gmra.mrb[34].mxu0 %vm821_vm0, %v506_v28  ;;  %v2227_v28 = vld [vmem:[%s5582_s7 + $0x108] sm:$0xff] }
  0x7b   : > { %3629 = vmatprep.mubr.msk.f32.mxu0 %vm821_vm0, %v507_v29  ;;  %v2226_v29 = vld [vmem:[%s5582_s7 + $0x100] sm:$0xff] }
  0x7d   : > { %788 = vperm.xlu1 %3962, %v564_v30   ;;  %783 = vperm.xlu0 %3961, %v563_v31  }
  0x7e   : > { %3630 = vmatmul.mubr.msk.f32.gmra.mrb[36].mxu0 %vm821_vm0, %v508_v32  ;;  %v2229_v32 = vld [vmem:[%s5582_s7 + $0x118] sm:$0xff] }
  0x7f   : > { %3632 = vmatprep.mubr.msk.f32.mxu0 %vm821_vm0, %v509_v33  ;;  %v2228_v33 = vld [vmem:[%s5582_s7 + $0x110] sm:$0xff] }
  0x81   : > { %798 = vperm.xlu1 %3962, %v566_v34   ;;  %793 = vperm.xlu0 %3961, %v565_v35   ;;  %v2231_v34 = vld [vmem:[%s5582_s7 + $0x128] sm:$0xff]  ;;  %v2230_v35 = vld [vmem:[%s5582_s7 + $0x120] sm:$0xff] }
  0x82   : > { %3633 = vmatmul.mubr.msk.f32.gmra.mrb[38].mxu0 %vm821_vm0, %v510_v36 }
  0x83   : > { %3635 = vmatprep.mubr.msk.f32.mxu0 %vm821_vm0, %v511_v37 }
  0x85   : > { %808 = vperm.xlu1 %3962, %v568_v38   ;;  %803 = vperm.xlu0 %3961, %v567_v39   ;;  %v2233_v38 = vld [vmem:[%s5582_s7 + $0x138] sm:$0xff]  ;;  %v2232_v39 = vld [vmem:[%s5582_s7 + $0x130] sm:$0xff] }
  0x86   : > { %3636 = vmatmul.mubr.msk.f32.gmra.mrb[40].mxu0 %vm821_vm0, %v512_v40 }
  0x87   : > { %3638 = vmatprep.mubr.msk.f32.mxu0 %vm821_vm0, %v513_v41 }
  0x89   : > { %818 = vperm.xlu1 %3962, %v570_v42   ;;  %813 = vperm.xlu0 %3961, %v569_v43   ;;  %v2235_v42 = vld [vmem:[%s5582_s7 + $0x148] sm:$0xff]  ;;  %v2234_v43 = vld [vmem:[%s5582_s7 + $0x140] sm:$0xff] }
  0x8a   : > { %3639 = vmatmul.mubr.msk.f32.gmra.mrb[42].mxu0 %vm821_vm0, %v514_v44  ;;  %v2237_v44 = vld [vmem:[%s5582_s7 + $0x158] sm:$0xff] }
  0x8b   : > { %3641 = vmatprep.mubr.msk.f32.mxu0 %vm821_vm0, %v515_v45  ;;  %v2236_v45 = vld [vmem:[%s5582_s7 + $0x150] sm:$0xff] }
  0x8d   : > { %1571 = vperm.xlu1 %3962, %v1482_v46   ;;  %1566 = vperm.xlu0 %3961, %v1481_v47  }
  0x8e   : > { %3642 = vmatmul.mubr.msk.f32.gmra.mrb[44].mxu0 %vm821_vm0, %v516_v48  ;;  %v2239_v48 = vld [vmem:[%s5582_s7 + $0x168] sm:$0xff] }
  0x8f   : > { %3644 = vmatprep.mubr.msk.f32.mxu0 %vm821_vm0, %v517_v49  ;;  %v2238_v49 = vld [vmem:[%s5582_s7 + $0x160] sm:$0xff] }
  0x91   : > { %1499 = vperm.xlu1 %3962, %v1465_v50   ;;  %1576 = vperm.xlu0 %3961, %v1483_v51  }
  0x92   : > { %3645 = vmatmul.mubr.msk.f32.gmra.mrb[46].mxu0 %vm821_vm0, %v518_v52  ;;  %v2241_v52 = vld [vmem:[%s5582_s7 + $0x178] sm:$0xff] }
  0x93   : > { %3647 = vmatprep.mubr.msk.f32.mxu0 %vm821_vm0, %v519_v53  ;;  %v2240_v53 = vld [vmem:[%s5582_s7 + $0x170] sm:$0xff] }
  0x95   : > { %1509 = vperm.xlu1 %3962, %v1467_v55   ;;  %1504 = vperm.xlu0 %3961, %v1466_v56   ;;  %v2243_v55 = vld [vmem:[%s5582_s7 + $0x188] sm:$0xff]  ;;  %v2242_v56 = vld [vmem:[%s5582_s7 + $0x180] sm:$0xff] }
  0x96   : > { %3648 = vmatmul.mubr.msk.f32.gmra.mrb[48].mxu0 %vm821_vm0, %v520_v57 }
  0x97   : > { %1792 = vmatprep.mubr.f32.mxu0 %v1338_v24 }
  0x99   : > { %2331 = vperm.xlu1 %3962, %v2211_v58   ;;  %2326 = vperm.xlu0 %3961, %v2210_v59   ;;  %v3015_v59 = vld [vmem:[#allocation2] sm:$0x1] }
  0x9d   : > { %2251 = vperm.xlu1 %3962, %v2195_v60   ;;  %2246 = vperm.xlu0 %3961, %v2194_v61  }
  0xa1   : > { %2341 = vperm.xlu1 %3962, %v2213_v62   ;;  %2336 = vperm.xlu0 %3961, %v2212_v63  }
  0xa5   : > { %2261 = vperm.xlu1 %3962, %v2197_v0   ;;  %2256 = vperm.xlu0 %3961, %v2196_v1  }
  0xa8   : > { %v4645_v30 = vpop.permute.xlu1 %583  ;;  %v574_v31 = vpop.permute.xlu0 %573 }
  0xa9   : > { %2351 = vperm.xlu1 %3962, %v2215_v2   ;;  %2346 = vperm.xlu0 %3961, %v2214_v3  }
  0xac   : > { %v589_v36 = vpop.permute.xlu1 %588  ;;  %v579_v37 = vpop.permute.xlu0 %578 }
  0xad   : > { %2271 = vperm.xlu1 %3962, %v2199_v4   ;;  %2266 = vperm.xlu0 %3961, %v2198_v5  }
  0xb0   : > { %v599_v40 = vpop.permute.xlu1 %598  ;;  %v594_v41 = vpop.permute.xlu0 %593 }
  0xb1   : > { %2361 = vperm.xlu1 %3962, %v2217_v6   ;;  %2356 = vperm.xlu0 %3961, %v2216_v7  }
  0xb4   : > { %v609_v46 = vpop.permute.xlu1 %608  ;;  %v4677_v47 = vpop.permute.xlu0 %603 }
  0xb5   : > { %2281 = vperm.xlu1 %3962, %v2201_v8   ;;  %2276 = vperm.xlu0 %3961, %v2200_v9  }
  0xb8   : > { %v4685_v50 = vpop.permute.xlu1 %618  ;;  %v4687_v51 = vpop.permute.xlu0 %613 }
  0xb9   : > { %2371 = vperm.xlu1 %3962, %v2219_v10   ;;  %2366 = vperm.xlu0 %3961, %v2218_v11  }
  0xbc   : > { %v4701_v57 = vpop.permute.xlu1 %628  ;;  %v4703_v58 = vpop.permute.xlu0 %623 }
  0xbd   : > { %2291 = vperm.xlu1 %3962, %v2203_v12   ;;  %2286 = vperm.xlu0 %3961, %v2202_v13  }
  0xc0   : > { %v4705_v60 = vpop.permute.xlu1 %638  ;;  %v4707_v61 = vpop.permute.xlu0 %633 }
  0xc1   : > { %2381 = vperm.xlu1 %3962, %v2221_v14   ;;  %2376 = vperm.xlu0 %3961, %v2220_v15  }
  0xc4   : > { %v4709_v62 = vpop.permute.xlu1 %648  ;;  %v4711_v63 = vpop.permute.xlu0 %643 }
  0xc5   : > { %2301 = vperm.xlu1 %3962, %v2205_v16   ;;  %2296 = vperm.xlu0 %3961, %v2204_v17  }
  0xc8   : > { %v4713_v0 = vpop.permute.xlu1 %658  ;;  %v4715_v2 = vpop.permute.xlu0 %653 }
  0xc9   : > { %2391 = vperm.xlu1 %3962, %v2223_v18   ;;  %2386 = vperm.xlu0 %3961, %v2222_v19  }
  0xcc   : > { %v4717_v11 = vpop.permute.xlu1 %668  ;;  %v4720_v14 = vpop.permute.xlu0 %663 }
  0xcd   : > { %2311 = vperm.xlu1 %3962, %v2207_v20   ;;  %2306 = vperm.xlu0 %3961, %v2206_v21  }
  0xd1   : > { %2401 = vperm.xlu1 %3962, %v2225_v22   ;;  %2396 = vperm.xlu0 %3961, %v2224_v23   ;;  %v4724_v23 = vpop.permute.xlu1 %678 }
  0xd5   : > { %2321 = vperm.xlu1 %3962, %v2209_v26   ;;  %2316 = vperm.xlu0 %3961, %v2208_v27   ;;  %v4726_v26 = vpop.permute.xlu0 %673 }
  0xd9   : > { %2411 = vperm.xlu1 %3962, %v2227_v28   ;;  %2406 = vperm.xlu0 %3961, %v2226_v29  }
  0xdd   : > { %2421 = vperm.xlu1 %3962, %v2229_v32   ;;  %2416 = vperm.xlu0 %3961, %v2228_v33  }
  0xe1   : > { %2431 = vperm.xlu1 %3962, %v2231_v34   ;;  %2426 = vperm.xlu0 %3961, %v2230_v35  }
  0xe5   : > { %2441 = vperm.xlu1 %3962, %v2233_v38   ;;  %2436 = vperm.xlu0 %3961, %v2232_v39   ;;  %v4737_v39 = vpop.permute.xlu0 %683 }
  0xe9   : > { %2451 = vperm.xlu1 %3962, %v2235_v42   ;;  %2446 = vperm.xlu0 %3961, %v2234_v43  }
  0xed   : > { %2461 = vperm.xlu1 %3962, %v2237_v44   ;;  %2456 = vperm.xlu0 %3961, %v2236_v45  }
  0xf1   : > { %2471 = vperm.xlu1 %3962, %v2239_v48   ;;  %2466 = vperm.xlu0 %3961, %v2238_v49  }
  0xf5   : > { %2481 = vperm.xlu1 %3962, %v2241_v52   ;;  %2476 = vperm.xlu0 %3961, %v2240_v53  }
  0xf9   : > { %2491 = vperm.xlu1 %3962, %v2243_v55   ;;  %2486 = vperm.xlu0 %3961, %v2242_v56  }
  0xfd   : > { %3018 = vperm.xlu0 %3961, %v3015_v59  }
 0x109   : > { %v3577_v1 = vpop.f32.mrb[0].mxu0 }
 0x10a   : > { %v1044_v3 = vadd.f32 %v3577_v1, %v579_v37  ;;  %v1038_v4 = vpop.f32.mrb[1].mxu0 }
 0x10b   : > { %v1039_v5 = vadd.f32 %v1038_v4, %v574_v31 }
 0x10c   : > { %v1288_v6 = vmax.f32 %v1044_v3, 0.0 }
 0x10d   : > { %v1287_v7 = vmax.f32 %v1039_v5, 0.0  ;;  %v3580_v8 = vpop.f32.mrb[2].mxu0 }
 0x10e   : > { %v1054_v9 = vadd.f32 %v3580_v8, %v589_v36  ;;  %v1048_v10 = vpop.f32.mrb[3].mxu0  ;;  %v4734_v36 = vpop.permute.xlu1 %688 }
 0x10f   : > { %v3740_v12 = vpack.c.bf16 %v1288_v6, %v1287_v7  ;;  %v1049_v13 = vadd.f32 %v1048_v10, %v4645_v30 }
 0x110   : > { %v1290_v15 = vmax.f32 %v1054_v9, 0.0 }
 0x111   : > { %v1289_v16 = vmax.f32 %v1049_v13, 0.0  ;;  %v3583_v17 = vpop.f32.mrb[4].mxu0  ;;  %3741 = vmatpush1.bf16.msra.mxu0 %v3740_v12  ;;  %3893 = vmatpush1.bf16.msra.mxu1 %v3740_v12 }
 0x112   : > { %v1064_v18 = vadd.f32 %v3583_v17, %v599_v40  ;;  %v1058_v19 = vpop.f32.mrb[5].mxu0  ;;  %3742 = vmatprep.subr.bf16.mxu0 %v4034_v54  ;;  %3878 = vmatprep.subr.bf16.mxu1 %v4034_v54  ;;  %v4743_v48 = vpop.permute.xlu1 %698 }
 0x113   : > { %v3743_v20 = vpack.c.bf16 %v1290_v15, %v1289_v16  ;;  %v1059_v21 = vadd.f32 %v1058_v19, %v594_v41 }
 0x114   : > { %v1292_v22 = vmax.f32 %v1064_v18, 0.0 }
 0x115   : > { %v1291_v24 = vmax.f32 %v1059_v21, 0.0  ;;  %v3586_v25 = vpop.f32.mrb[6].mxu0  ;;  %3744 = vmatpush1.bf16.msra.mxu0 %v3743_v20  ;;  %3894 = vmatpush1.bf16.msra.mxu1 %v3743_v20 }
 0x116   : > { %v1074_v27 = vadd.f32 %v3586_v25, %v609_v46  ;;  %v1068_v28 = vpop.f32.mrb[7].mxu0  ;;  %3745 = vmatprep.subr.bf16.mxu0 %v4034_v54  ;;  %3879 = vmatprep.subr.bf16.mxu1 %v4034_v54 }
 0x117   : > { %v3746_v29 = vpack.c.bf16 %v1292_v22, %v1291_v24  ;;  %v1069_v30 = vadd.f32 %v1068_v28, %v4677_v47 }
 0x118   : > { %v1294_v31 = vmax.f32 %v1074_v27, 0.0 }
 0x119   : > { %v1293_v32 = vmax.f32 %v1069_v30, 0.0  ;;  %v3589_v33 = vpop.f32.mrb[8].mxu0  ;;  %3747 = vmatpush1.bf16.msra.mxu0 %v3746_v29  ;;  %3895 = vmatpush1.bf16.msra.mxu1 %v3746_v29 }
 0x11a   : > { %v1084_v34 = vadd.f32 %v3589_v33, %v4685_v50  ;;  %v1078_v35 = vpop.f32.mrb[9].mxu0  ;;  %3748 = vmatprep.subr.bf16.mxu0 %v4034_v54  ;;  %3880 = vmatprep.subr.bf16.mxu1 %v4034_v54 }
 0x11b   : > { %v3749_v37 = vpack.c.bf16 %v1294_v31, %v1293_v32  ;;  %v1079_v38 = vadd.f32 %v1078_v35, %v4687_v51  ;;  %v4745_v51 = vpop.permute.xlu0 %693 }
 0x11c   : > { %v1296_v40 = vmax.f32 %v1084_v34, 0.0 }
 0x11d   : > { %v1295_v41 = vmax.f32 %v1079_v38, 0.0  ;;  %v3592_v42 = vpop.f32.mrb[10].mxu0  ;;  %3750 = vmatpush1.bf16.msra.mxu0 %v3749_v37  ;;  %3896 = vmatpush1.bf16.msra.mxu1 %v3749_v37 }
 0x11e   : > { %v1094_v43 = vadd.f32 %v3592_v42, %v4701_v57  ;;  %v1088_v44 = vpop.f32.mrb[11].mxu0  ;;  %3751 = vmatprep.subr.bf16.mxu0 %v4034_v54  ;;  %3881 = vmatprep.subr.bf16.mxu1 %v4034_v54 }
 0x11f   : > { %v3752_v45 = vpack.c.bf16 %v1296_v40, %v1295_v41  ;;  %v1089_v46 = vadd.f32 %v1088_v44, %v4703_v58  ;;  %v4757_v6 = vpop.permute.xlu0 %703 }
 0x120   : > { %v1298_v47 = vmax.f32 %v1094_v43, 0.0 }
 0x121   : > { %v1297_v49 = vmax.f32 %v1089_v46, 0.0  ;;  %v3595_v50 = vpop.f32.mrb[12].mxu0  ;;  %3753 = vmatpush1.bf16.msra.mxu0 %v3752_v45  ;;  %3897 = vmatpush1.bf16.msra.mxu1 %v3752_v45 }
 0x122   : > { %v1104_v52 = vadd.f32 %v3595_v50, %v4705_v60  ;;  %v1098_v53 = vpop.f32.mrb[13].mxu0  ;;  %3754 = vmatprep.subr.bf16.mxu0 %v4034_v54  ;;  %3882 = vmatprep.subr.bf16.mxu1 %v4034_v54  ;;  %v4754_v60 = vpop.permute.xlu1 %708 }
 0x123   : > { %v3755_v55 = vpack.c.bf16 %v1298_v47, %v1297_v49  ;;  %v1099_v56 = vadd.f32 %v1098_v53, %v4707_v61  ;;  %v4765_v17 = vpop.permute.xlu0 %713 }
 0x124   : > { %v1300_v57 = vmax.f32 %v1104_v52, 0.0 }
 0x125   : > { %v1299_v58 = vmax.f32 %v1099_v56, 0.0  ;;  %v3598_v59 = vpop.f32.mrb[14].mxu0  ;;  %3756 = vmatpush1.bf16.msra.mxu0 %v3755_v55  ;;  %3898 = vmatpush1.bf16.msra.mxu1 %v3755_v55 }
 0x126   : > { %v1114_v1 = vadd.f32 %v3598_v59, %v4709_v62  ;;  %v1108_v3 = vpop.f32.mrb[15].mxu0  ;;  %3757 = vmatprep.subr.bf16.mxu0 %v4034_v54  ;;  %3883 = vmatprep.subr.bf16.mxu1 %v4034_v54  ;;  %v4763_v15 = vpop.permute.xlu1 %718 }
 0x127   : > { %v3758_v4 = vpack.c.bf16 %v1300_v57, %v1299_v58  ;;  %v1109_v5 = vadd.f32 %v1108_v3, %v4711_v63  ;;  %v724_v29 = vpop.permute.xlu0 %723 }
 0x128   : > { %v1302_v61 = vmax.f32 %v1114_v1, 0.0 }
 0x129   : > { %v1301_v7 = vmax.f32 %v1109_v5, 0.0  ;;  %v3601_v8 = vpop.f32.mrb[16].mxu0  ;;  %3759 = vmatpush1.bf16.msra.mxu0 %v3758_v4  ;;  %3899 = vmatpush1.bf16.msra.mxu1 %v3758_v4 }
 0x12a   : > { %v1124_v9 = vadd.f32 %v3601_v8, %v4713_v0  ;;  %v1118_v62 = vpop.f32.mrb[17].mxu0  ;;  %3760 = vmatprep.subr.bf16.mxu0 %v4034_v54  ;;  %3884 = vmatprep.subr.bf16.mxu1 %v4034_v54 }
 0x12b   : > { %v3761_v10 = vpack.c.bf16 %v1302_v61, %v1301_v7  ;;  %v1119_v12 = vadd.f32 %v1118_v62, %v4715_v2  ;;  %v734_v40 = vpop.permute.xlu0 %733 }
 0x12c   : > { %v1304_v13 = vmax.f32 %v1124_v9, 0.0 }
 0x12d   : > { %v1303_v63 = vmax.f32 %v1119_v12, 0.0  ;;  %v3604_v16 = vpop.f32.mrb[18].mxu0  ;;  %3762 = vmatpush1.bf16.msra.mxu0 %v3761_v10  ;;  %3900 = vmatpush1.bf16.msra.mxu1 %v3761_v10 }
 0x12e   : > { %v1134_v18 = vadd.f32 %v3604_v16, %v4717_v11  ;;  %v1128_v0 = vpop.f32.mrb[19].mxu0  ;;  %3763 = vmatprep.subr.bf16.mxu0 %v4034_v54  ;;  %3885 = vmatprep.subr.bf16.mxu1 %v4034_v54  ;;  %v729_v11 = vpop.permute.xlu1 %728 }
 0x12f   : > { %v3764_v19 = vpack.c.bf16 %v1304_v13, %v1303_v63  ;;  %v1129_v20 = vadd.f32 %v1128_v0, %v4720_v14  ;;  %v744_v52 = vpop.permute.xlu0 %743 }
 0x130   : > { %v1306_v2 = vmax.f32 %v1134_v18, 0.0 }
 0x131   : > { %v1305_v21 = vmax.f32 %v1129_v20, 0.0  ;;  %v3607_v22 = vpop.f32.mrb[20].mxu0  ;;  %3765 = vmatpush1.bf16.msra.mxu0 %v3764_v19  ;;  %3901 = vmatpush1.bf16.msra.mxu1 %v3764_v19  ;;  %v1337_v20 = vld [vmem:[%s5579_s4] sm:$0xff] }
 0x132   : > { %v1144_v24 = vadd.f32 %v3607_v22, %v4724_v23  ;;  %v1138_v25 = vpop.f32.mrb[21].mxu0  ;;  %3766 = vmatprep.subr.bf16.mxu0 %v4034_v54  ;;  %3886 = vmatprep.subr.bf16.mxu1 %v4034_v54  ;;  %v739_v37 = vpop.permute.xlu1 %738 }
 0x133   : > { %v3767_v27 = vpack.c.bf16 %v1306_v2, %v1305_v21  ;;  %v1139_v28 = vadd.f32 %v1138_v25, %v4726_v26  ;;  %v754_v5 = vpop.permute.xlu0 %753  ;;  %v1373_v2 = vld [vmem:[%s5579_s4 + $0x120] sm:$0xff] }
 0x134   : > { %v1308_v30 = vmax.f32 %v1144_v24, 0.0  ;;  %v1342_v24 = vld [vmem:[%s5579_s4 + $0x28] sm:$0xff] }
 0x135   : > { %v1307_v31 = vmax.f32 %v1139_v28, 0.0  ;;  %v3610_v14 = vpop.f32.mrb[22].mxu0  ;;  %3768 = vmatpush1.bf16.msra.mxu0 %v3767_v27  ;;  %3902 = vmatpush1.bf16.msra.mxu1 %v3767_v27  ;;  %v1378_v27 = vld [vmem:[%s5579_s4 + $0x148] sm:$0xff] }
 0x136   : > { %v1154_v32 = vadd.f32 %v3610_v14, %v4734_v36  ;;  %v1148_v33 = vpop.f32.mrb[23].mxu0  ;;  %3769 = vmatprep.subr.bf16.mxu0 %v4034_v54  ;;  %3887 = vmatprep.subr.bf16.mxu1 %v4034_v54  ;;  %v1341_v14 = vld [vmem:[%s5579_s4 + $0x20] sm:$0xff] }
 0x137   : > { %v3770_v23 = vpack.c.bf16 %v1308_v30, %v1307_v31  ;;  %v1149_v34 = vadd.f32 %v1148_v33, %v4737_v39 }
 0x138   : > { %v1310_v35 = vmax.f32 %v1154_v32, 0.0  ;;  %v1377_v32 = vld [vmem:[%s5579_s4 + $0x140] sm:$0xff] }
 0x139   : > { %v1309_v38 = vmax.f32 %v1149_v34, 0.0  ;;  %v3613_v26 = vpop.f32.mrb[24].mxu0  ;;  %3771 = vmatpush1.bf16.msra.mxu0 %v3770_v23  ;;  %3903 = vmatpush1.bf16.msra.mxu1 %v3770_v23 }
 0x13a   : > { %v1164_v41 = vadd.f32 %v3613_v26, %v4743_v48  ;;  %v1158_v42 = vpop.f32.mrb[25].mxu0  ;;  %3772 = vmatprep.subr.bf16.mxu0 %v4034_v54  ;;  %3888 = vmatprep.subr.bf16.mxu1 %v4034_v54  ;;  %v749_v48 = vpop.permute.xlu1 %748  ;;  %v1382_v26 = vld [vmem:[%s5579_s4 + $0x168] sm:$0xff] }
 0x13b   : > { %v3773_v36 = vpack.c.bf16 %v1310_v35, %v1309_v38  ;;  %v1159_v43 = vadd.f32 %v1158_v42, %v4745_v51  ;;  %v1346_v35 = vld [vmem:[%s5579_s4 + $0x48] sm:$0xff] }
 0x13c   : > { %v1312_v44 = vmax.f32 %v1164_v41, 0.0 }
 0x13d   : > { %v1311_v45 = vmax.f32 %v1159_v43, 0.0  ;;  %v3616_v39 = vpop.f32.mrb[26].mxu0  ;;  %3774 = vmatpush1.bf16.msra.mxu0 %v3773_v36  ;;  %3904 = vmatpush1.bf16.msra.mxu1 %v3773_v36  ;;  %v1345_v36 = vld [vmem:[%s5579_s4 + $0x40] sm:$0xff] }
 0x13e   : > { %v1174_v46 = vadd.f32 %v3616_v39, %v4754_v60  ;;  %v1168_v47 = vpop.f32.mrb[27].mxu0  ;;  %3775 = vmatprep.subr.bf16.mxu0 %v4034_v54  ;;  %3889 = vmatprep.subr.bf16.mxu1 %v4034_v54  ;;  %v759_v3 = vpop.permute.xlu1 %758  ;;  %v1381_v43 = vld [vmem:[%s5579_s4 + $0x160] sm:$0xff]  ;;  %v1386_v39 = vld [vmem:[%s5579_s4 + $0x188] sm:$0xff] }
 0x13f   : > { %v3776_v49 = vpack.c.bf16 %v1312_v44, %v1311_v45  ;;  %v1169_v50 = vadd.f32 %v1168_v47, %v4757_v6 }
 0x140   : > { %v1314_v53 = vmax.f32 %v1174_v46, 0.0 }
 0x141   : > { %v1313_v55 = vmax.f32 %v1169_v50, 0.0  ;;  %v3619_v51 = vpop.f32.mrb[28].mxu0  ;;  %3777 = vmatpush1.bf16.msra.mxu0 %v3776_v49  ;;  %3905 = vmatpush1.bf16.msra.mxu1 %v3776_v49 }
 0x142   : > { %v1184_v56 = vadd.f32 %v3619_v51, %v4763_v15  ;;  %v1178_v57 = vpop.f32.mrb[29].mxu0  ;;  %3778 = vmatprep.subr.bf16.mxu0 %v4034_v54  ;;  %3890 = vmatprep.subr.bf16.mxu1 %v4034_v54  ;;  %v769_v15 = vpop.permute.xlu1 %768 }
 0x143   : > { %v3779_v58 = vpack.c.bf16 %v1314_v53, %v1313_v55  ;;  %v1179_v59 = vadd.f32 %v1178_v57, %v4765_v17  ;;  %v764_v17 = vpop.permute.xlu0 %763  ;;  %v1385_v55 = vld [vmem:[%s5579_s4 + $0x180] sm:$0xff]  ;;  %v1390_v57 = vld [vmem:[%s5579_s4 + $0x1a8] sm:$0xff] }
 0x144   : > { %v1316_v1 = vmax.f32 %v1184_v56, 0.0 }
 0x145   : > { %v1315_v60 = vmax.f32 %v1179_v59, 0.0  ;;  %v3622_v4 = vpop.f32.mrb[30].mxu0  ;;  %3780 = vmatpush1.bf16.msra.mxu0 %v3779_v58  ;;  %3906 = vmatpush1.bf16.msra.mxu1 %v3779_v58 }
 0x146   : > { %v1194_v6 = vadd.f32 %v3622_v4, %v729_v11  ;;  %v1188_v61 = vpop.f32.mrb[31].mxu0  ;;  %3781 = vmatprep.subr.bf16.mxu0 %v4034_v54  ;;  %3891 = vmatprep.subr.bf16.mxu1 %v4034_v54 }
 0x147   : > { %v3782_v7 = vpack.c.bf16 %v1316_v1, %v1315_v60  ;;  %v1189_v8 = vadd.f32 %v1188_v61, %v724_v29  ;;  %v779_v29 = vpop.permute.xlu1 %778  ;;  %v774_v33 = vpop.permute.xlu0 %773 }
 0x148   : > { %v1318_v9 = vmax.f32 %v1194_v6, 0.0 }
 0x149   : > { %v1317_v62 = vmax.f32 %v1189_v8, 0.0  ;;  %v3625_v10 = vpop.f32.mrb[32].mxu0  ;;  %3783 = vmatpush1.bf16.msra.mxu0 %v3782_v7  ;;  %3907 = vmatpush1.bf16.msra.mxu1 %v3782_v7  ;;  %v1394_v8 = vld [vmem:[%s5579_s4 + $0x1c8] sm:$0xff] }
 0x14a   : > { %v1204_v12 = vadd.f32 %v3625_v10, %v739_v37  ;;  %v1198_v13 = vpop.f32.mrb[33].mxu0  ;;  %3784 = vmatprep.subr.bf16.mxu0 %v4034_v54  ;;  %3892 = vmatprep.subr.bf16.mxu1 %v4034_v54 }
 0x14b   : > { %v3785_v63 = vpack.c.bf16 %v1318_v9, %v1317_v62  ;;  %v1199_v16 = vadd.f32 %v1198_v13, %v734_v40  ;;  %v789_v46 = vpop.permute.xlu1 %788  ;;  %v784_v49 = vpop.permute.xlu0 %783 }
 0x14c   : > { %v1320_v18 = vmax.f32 %v1204_v12, 0.0 }
 0x14d   : > { %v1319_v0 = vmax.f32 %v1199_v16, 0.0  ;;  %v3628_v19 = vpop.f32.mrb[34].mxu0  ;;  %3786 = vmatpush1.bf16.msra.mxu0 %v3785_v63  ;;  %3908 = vmatpush1.bf16.msra.mxu1 %v3785_v63 }
 0x14e   : > { %v1214_v21 = vadd.f32 %v3628_v19, %v749_v48  ;;  %v1208_v22 = vpop.f32.mrb[35].mxu0  ;;  %3787 = vmatprep.subr.bf16.mxu1 %v4034_v54 }
 0x14f   : > { %v3788_v25 = vpack.c.bf16 %v1320_v18, %v1319_v0  ;;  %v1209_v11 = vadd.f32 %v1208_v22, %v744_v52  ;;  %v794_v6 = vpop.permute.xlu0 %793 }
 0x150   : > { %v1322_v28 = vmax.f32 %v1214_v21, 0.0  ;;  %1793 = vmatmul.mubr.f32.vlgmr.msra.gmra.mrb[50].mxu0 %v1337_v20  ;;  %1832 = vmatmul.mubr.f32.vlgmr.msra.gmra.mrb[0].mxu1 %v1373_v2 }
 0x151   : > { %v1321_v30 = vmax.f32 %v1209_v11, 0.0  ;;  %v3631_v31 = vpop.f32.mrb[36].mxu0  ;;  %3789 = vmatpush1.bf16.msra.mxu1 %v3788_v25  ;;  %1797 = vmatprep.mubr.f32.mxu0 %v1342_v24  ;;  %v1397_v24 = vld [vmem:[%s5579_s4 + $0x1e0] sm:$0xff] }
 0x152   : > { %v1224_v23 = vadd.f32 %v3631_v31, %v759_v3  ;;  %v1218_v34 = vpop.f32.mrb[37].mxu0  ;;  %1835 = vmatprep.mubr.f32.mxu1 %v1378_v27  ;;  %3790 = vmatprep.subr.bf16.mxu1 %v4034_v54  ;;  %v799_v3 = vpop.permute.xlu1 %798  ;;  %v1402_v27 = vld [vmem:[%s5579_s4 + $0x208] sm:$0xff] }
 0x153   : > { %v3791_v37 = vpack.c.bf16 %v1322_v28, %v1321_v30  ;;  %v1219_v38 = vadd.f32 %v1218_v34, %v754_v5  ;;  %v1389_v5 = vld [vmem:[%s5579_s4 + $0x1a0] sm:$0xff]  ;;  %v804_v20 = vpop.permute.xlu0 %803 }
 0x154   : > { %v1324_v40 = vmax.f32 %v1224_v23, 0.0  ;;  %1798 = vmatmul.mubr.f32.gmra.mrb[52].mxu0 %v1341_v14  ;;  %1836 = vmatmul.mubr.f32.gmra.mrb[2].mxu1 %v1377_v32 }
 0x155   : > { %v1323_v41 = vmax.f32 %v1219_v38, 0.0  ;;  %v3634_v42 = vpop.f32.mrb[38].mxu0  ;;  %3792 = vmatpush1.bf16.msra.mxu1 %v3791_v37  ;;  %1802 = vmatprep.mubr.f32.mxu0 %v1346_v35  ;;  %v1406_v37 = vld [vmem:[%s5579_s4 + $0x228] sm:$0xff] }
 0x156   : > { %v1234_v44 = vadd.f32 %v3634_v42, %v769_v15  ;;  %v1228_v45 = vpop.f32.mrb[39].mxu0  ;;  %1839 = vmatprep.mubr.f32.mxu1 %v1382_v26  ;;  %3793 = vmatprep.subr.bf16.mxu1 %v4034_v54  ;;  %v1393_v15 = vld [vmem:[%s5579_s4 + $0x1c0] sm:$0xff]  ;;  %v809_v18 = vpop.permute.xlu1 %808 }
 0x157   : > { %v3794_v47 = vpack.c.bf16 %v1324_v40, %v1323_v41  ;;  %v1229_v48 = vadd.f32 %v1228_v45, %v764_v17  ;;  %v1398_v17 = vld [vmem:[%s5579_s4 + $0x1e8] sm:$0xff]  ;;  %v814_v23 = vpop.permute.xlu0 %813  ;;  %v1405_v42 = vld [vmem:[%s5579_s4 + $0x220] sm:$0xff] }
 0x158   : > { %v1326_v50 = vmax.f32 %v1234_v44, 0.0  ;;  %1803 = vmatmul.mubr.f32.gmra.mrb[54].mxu0 %v1345_v36  ;;  %1840 = vmatmul.mubr.f32.gmra.mrb[4].mxu1 %v1381_v43  ;;  %v1410_v36 = vld [vmem:[%s5579_s4 + $0x248] sm:$0xff]  ;;  %v1409_v44 = vld [vmem:[%s5579_s4 + $0x240] sm:$0xff] }
 0x159   : > { %v1325_v52 = vmax.f32 %v1229_v48, 0.0  ;;  %v3637_v53 = vpop.f32.mrb[40].mxu0  ;;  %3795 = vmatpush1.bf16.msra.mxu1 %v3794_v47  ;;  %1843 = vmatprep.mubr.f32.mxu1 %v1386_v39  ;;  %v1414_v45 = vld [vmem:[%s5579_s4 + $0x268] sm:$0xff]  ;;  %v1413_v39 = vld [vmem:[%s5579_s4 + $0x260] sm:$0xff] }
 0x15a   : > { %v1244_v51 = vadd.f32 %v3637_v53, %v779_v29  ;;  %v1238_v56 = vpop.f32.mrb[41].mxu0  ;;  %3796 = vmatprep.subr.bf16.mxu1 %v4034_v54  ;;  %v819_v31 = vpop.permute.xlu1 %818  ;;  %v1417_v47 = vld [vmem:[%s5579_s4 + $0x280] sm:$0xff]  ;;  %v1422_v48 = vld [vmem:[%s5579_s4 + $0x2a8] sm:$0xff] }
 0x15b   : > { %v3797_v58 = vpack.c.bf16 %v1326_v50, %v1325_v52  ;;  %v1239_v59 = vadd.f32 %v1238_v56, %v774_v33  ;;  %v1401_v33 = vld [vmem:[%s5579_s4 + $0x200] sm:$0xff]  ;;  %v1426_v50 = vld [vmem:[%s5579_s4 + $0x2c8] sm:$0xff] }
 0x15c   : > { %v1328_v1 = vmax.f32 %v1244_v51, 0.0  ;;  %1844 = vmatmul.mubr.f32.gmra.mrb[6].mxu1 %v1385_v55  ;;  %v1425_v52 = vld [vmem:[%s5579_s4 + $0x2c0] sm:$0xff]  ;;  %v1430_v53 = vld [vmem:[%s5579_s4 + $0x2e8] sm:$0xff] }
 0x15d   : > { %v1327_v60 = vmax.f32 %v1239_v59, 0.0  ;;  %v3640_v4 = vpop.f32.mrb[42].mxu0  ;;  %3798 = vmatpush1.bf16.msra.mxu1 %v3797_v58  ;;  %1847 = vmatprep.mubr.f32.mxu1 %v1390_v57  ;;  %v1429_v55 = vld [vmem:[%s5579_s4 + $0x2e0] sm:$0xff]  ;;  %v1434_v51 = vld [vmem:[%s5579_s4 + $0x308] sm:$0xff] }
 0x15e   : > { %v1254_v61 = vadd.f32 %v3640_v4, %v789_v46  ;;  %v1248_v7 = vpop.f32.mrb[43].mxu0  ;;  %3799 = vmatprep.subr.bf16.mxu1 %v4034_v54  ;;  %v1418_v46 = vld [vmem:[%s5579_s4 + $0x288] sm:$0xff]  ;;  %v1433_v56 = vld [vmem:[%s5579_s4 + $0x300] sm:$0xff] }
 0x15f   : > { %v3800_v9 = vpack.c.bf16 %v1328_v1, %v1327_v60  ;;  %v1249_v62 = vadd.f32 %v1248_v7, %v784_v49  ;;  %v1421_v49 = vld [vmem:[%s5579_s4 + $0x2a0] sm:$0xff]  ;;  %v1438_v57 = vld [vmem:[%s5579_s4 + $0x328] sm:$0xff] }
 0x160   : > { %v1330_v10 = vmax.f32 %v1254_v61, 0.0  ;;  %1848 = vmatmul.mubr.f32.gmra.mrb[8].mxu1 %v1389_v5  ;;  %v1437_v58 = vld [vmem:[%s5579_s4 + $0x320] sm:$0xff]  ;;  %v1442_v59 = vld [vmem:[%s5579_s4 + $0x348] sm:$0xff] }
 0x161   : > { %v1329_v12 = vmax.f32 %v1249_v62, 0.0  ;;  %v3643_v13 = vpop.f32.mrb[44].mxu0  ;;  %3801 = vmatpush1.bf16.msra.mxu1 %v3800_v9  ;;  %1851 = vmatprep.mubr.f32.mxu1 %v1394_v8  ;;  %v1441_v1 = vld [vmem:[%s5579_s4 + $0x340] sm:$0xff]  ;;  %v1450_v4 = vld [vmem:[%s5579_s4 + $0x388] sm:$0xff] }
 0x162   : > { %v1264_v63 = vadd.f32 %v3643_v13, %v799_v3  ;;  %v1258_v16 = vpop.f32.mrb[45].mxu0  ;;  %3802 = vmatprep.subr.bf16.mxu1 %v4034_v54  ;;  %v1446_v3 = vld [vmem:[%s5579_s4 + $0x368] sm:$0xff]  ;;  %v1445_v60 = vld [vmem:[%s5579_s4 + $0x360] sm:$0xff]  ;;  %v1344_v13 = vld [vmem:[%s5579_s4 + $0x38] sm:$0xff] }
 0x163   : > { %v3803_v0 = vpack.c.bf16 %v1330_v10, %v1329_v12  ;;  %v1259_v19 = vadd.f32 %v1258_v16, %v794_v6  ;;  %v1449_v5 = vld [vmem:[%s5579_s4 + $0x380] sm:$0xff]  ;;  %v1454_v6 = vld [vmem:[%s5579_s4 + $0x3a8] sm:$0xff]  ;;  %v1340_v10 = vld [vmem:[%s5579_s4 + $0x18] sm:$0xff] }
 0x164   : > { %v1332_v2 = vmax.f32 %v1264_v63, 0.0  ;;  %1852 = vmatmul.mubr.f32.gmra.mrb[10].mxu1 %v1393_v15  ;;  %v1453_v61 = vld [vmem:[%s5579_s4 + $0x3a0] sm:$0xff]  ;;  %v1458_v7 = vld [vmem:[%s5579_s4 + $0x3c8] sm:$0xff]  ;;  %v1339_v12 = vld [vmem:[%s5579_s4 + $0x10] sm:$0xff] }
 0x165   : > { %v1331_v21 = vmax.f32 %v1259_v19, 0.0  ;;  %v3646_v22 = vpop.f32.mrb[46].mxu0  ;;  %3804 = vmatpush1.bf16.msra.mxu1 %v3803_v0  ;;  %1855 = vmatprep.mubr.f32.mxu1 %v1398_v17  ;;  %v1457_v8 = vld [vmem:[%s5579_s4 + $0x3c0] sm:$0xff]  ;;  %v1462_v9 = vld [vmem:[%s5579_s4 + $0x3e8] sm:$0xff]  ;;  %v1343_v15 = vld [vmem:[%s5579_s4 + $0x30] sm:$0xff] }
 0x166   : > { %v1274_v25 = vadd.f32 %v3646_v22, %v809_v18  ;;  %v1268_v11 = vpop.f32.mrb[47].mxu0  ;;  %3805 = vmatprep.subr.bf16.mxu1 %v4034_v54  ;;  %v1461_v62 = vld [vmem:[%s5579_s4 + $0x3e0] sm:$0xff]  ;;  %v1348_v63 = vld [vmem:[%s5579_s4 + $0x58] sm:$0xff]  ;;  %v1347_v16 = vld [vmem:[%s5579_s4 + $0x50] sm:$0xff] }
 0x167   : > { %v3806_v28 = vpack.c.bf16 %v1332_v2, %v1331_v21  ;;  %v1269_v29 = vadd.f32 %v1268_v11, %v804_v20  ;;  %v1352_v17 = vld [vmem:[%s5579_s4 + $0x78] sm:$0xff]  ;;  %v1351_v18 = vld [vmem:[%s5579_s4 + $0x70] sm:$0xff] }
 0x168   : > { %v1334_v30 = vmax.f32 %v1274_v25, 0.0  ;;  %1856 = vmatmul.mubr.f32.gmra.mrb[12].mxu1 %v1397_v24  ;;  %v1356_v0 = vld [vmem:[%s5579_s4 + $0x98] sm:$0xff]  ;;  %v1355_v19 = vld [vmem:[%s5579_s4 + $0x90] sm:$0xff] }
 0x169   : > { %v1333_v14 = vmax.f32 %v1269_v29, 0.0  ;;  %v3649_v32 = vpop.f32.mrb[48].mxu0  ;;  %3807 = vmatpush1.bf16.msra.mxu1 %v3806_v28  ;;  %1859 = vmatprep.mubr.f32.mxu1 %v1402_v27  ;;  %v1360_v20 = vld [vmem:[%s5579_s4 + $0xb8] sm:$0xff]  ;;  %v1359_v2 = vld [vmem:[%s5579_s4 + $0xb0] sm:$0xff] }
 0x16a   : > { %v1284_v34 = vadd.f32 %v3649_v32, %v819_v31  ;;  %v1278_v35 = vpop.f32.mrb[49].mxu0  ;;  %3808 = vmatprep.subr.bf16.mxu1 %v4034_v54  ;;  %v1364_v21 = vld [vmem:[%s5579_s4 + $0xd8] sm:$0xff]  ;;  %v1363_v22 = vld [vmem:[%s5579_s4 + $0xd0] sm:$0xff] }
 0x16b   : > { %v3809_v38 = vpack.c.bf16 %v1334_v30, %v1333_v14  ;;  %v1279_v26 = vadd.f32 %v1278_v35, %v814_v23  ;;  %v1368_v24 = vld [vmem:[%s5579_s4 + $0xf8] sm:$0xff]  ;;  %v1367_v25 = vld [vmem:[%s5579_s4 + $0xf0] sm:$0xff] }
 0x16c   : > { %v1336_v40 = vmax.f32 %v1284_v34, 0.0  ;;  %1860 = vmatmul.mubr.f32.gmra.mrb[14].mxu1 %v1401_v33  ;;  %v1372_v11 = vld [vmem:[%s5579_s4 + $0x118] sm:$0xff]  ;;  %v1371_v27 = vld [vmem:[%s5579_s4 + $0x110] sm:$0xff] }
 0x16d   : > { %v1335_v41 = vmax.f32 %v1279_v26, 0.0  ;;  %3810 = vmatpush1.bf16.msra.mxu1 %v3809_v38  ;;  %1864 = vmatprep.mubr.f32.mxu1 %v1406_v37  ;;  %v1376_v28 = vld [vmem:[%s5579_s4 + $0x138] sm:$0xff]  ;;  %v1375_v29 = vld [vmem:[%s5579_s4 + $0x130] sm:$0xff] }
 0x16e   : > { %3811 = vmatprep.subr.bf16.mxu1 %v4034_v54  ;;  %v1380_v30 = vld [vmem:[%s5579_s4 + $0x158] sm:$0xff]  ;;  %v1379_v31 = vld [vmem:[%s5579_s4 + $0x150] sm:$0xff] }
 0x16f   : > { %v3812_v43 = vpack.c.bf16 %v1336_v40, %v1335_v41  ;;  %v1384_v14 = vld [vmem:[%s5579_s4 + $0x178] sm:$0xff]  ;;  %v1383_v32 = vld [vmem:[%s5579_s4 + $0x170] sm:$0xff] }
 0x170   : > { %1865 = vmatmul.mubr.f32.gmra.mrb[16].mxu1 %v1405_v42  ;;  %v1388_v33 = vld [vmem:[%s5579_s4 + $0x198] sm:$0xff]  ;;  %v1387_v23 = vld [vmem:[%s5579_s4 + $0x190] sm:$0xff] }
 0x171   : > { %3813 = vmatpush1.bf16.msra.mxu1 %v3812_v43  ;;  %1869 = vmatprep.mubr.f32.mxu1 %v1410_v36  ;;  %v1392_v34 = vld [vmem:[%s5579_s4 + $0x1b8] sm:$0xff]  ;;  %v1391_v35 = vld [vmem:[%s5579_s4 + $0x1b0] sm:$0xff] }
 0x172   : > { %v1396_v37 = vld [vmem:[%s5579_s4 + $0x1d8] sm:$0xff]  ;;  %v1395_v38 = vld [vmem:[%s5579_s4 + $0x1d0] sm:$0xff] }
 0x173   : > { %v1400_v26 = vld [vmem:[%s5579_s4 + $0x1f8] sm:$0xff]  ;;  %v1399_v40 = vld [vmem:[%s5579_s4 + $0x1f0] sm:$0xff] }
 0x174   : > { %1870 = vmatmul.mubr.f32.gmra.mrb[18].mxu1 %v1409_v44  ;;  %v1404_v41 = vld [vmem:[%s5579_s4 + $0x218] sm:$0xff]  ;;  %v1403_v42 = vld [vmem:[%s5579_s4 + $0x210] sm:$0xff] }
 0x175   : > { %1874 = vmatprep.mubr.f32.mxu1 %v1414_v45  ;;  %v1408_v36 = vld [vmem:[%s5579_s4 + $0x238] sm:$0xff]  ;;  %v1407_v43 = vld [vmem:[%s5579_s4 + $0x230] sm:$0xff] }
 0x176   : > { %v1412_v44 = vld [vmem:[%s5579_s4 + $0x258] sm:$0xff]  ;;  %v1411_v45 = vld [vmem:[%s5579_s4 + $0x250] sm:$0xff] }
 0x178   : > { %1875 = vmatmul.mubr.f32.gmra.mrb[20].mxu1 %v1413_v39 }
 0x179   : > { %1878 = vmatprep.mubr.f32.mxu1 %v1418_v46 }
 0x17c   : > { %1879 = vmatmul.mubr.f32.gmra.mrb[22].mxu1 %v1417_v47 }
 0x17d   : > { %1882 = vmatprep.mubr.f32.mxu1 %v1422_v48 }
 0x180   : > { %1883 = vmatmul.mubr.f32.gmra.mrb[24].mxu1 %v1421_v49 }
 0x181   : > { %1886 = vmatprep.mubr.f32.mxu1 %v1426_v50 }
 0x184   : > { %1887 = vmatmul.mubr.f32.gmra.mrb[26].mxu1 %v1425_v52 }
 0x185   : > { %1890 = vmatprep.mubr.f32.mxu1 %v1430_v53 }
 0x188   : > { %1891 = vmatmul.mubr.f32.gmra.mrb[28].mxu1 %v1429_v55 }
 0x189   : > { %1894 = vmatprep.mubr.f32.mxu1 %v1434_v51 }
 0x18c   : > { %1895 = vmatmul.mubr.f32.gmra.mrb[30].mxu1 %v1433_v56 }
 0x18d   : > { %1898 = vmatprep.mubr.f32.mxu1 %v1438_v57 }
 0x190   : > { %1899 = vmatmul.mubr.f32.gmra.mrb[32].mxu1 %v1437_v58 }
 0x191   : > { %1902 = vmatprep.mubr.f32.mxu1 %v1442_v59 }
 0x194   : > { %1903 = vmatmul.mubr.f32.gmra.mrb[34].mxu1 %v1441_v1 }
 0x195   : > { %1906 = vmatprep.mubr.f32.mxu1 %v1446_v3 }
 0x198   : > { %1907 = vmatmul.mubr.f32.gmra.mrb[36].mxu1 %v1445_v60 }
 0x199   : > { %1910 = vmatprep.mubr.f32.mxu1 %v1450_v4 }
 0x19c   : > { %1911 = vmatmul.mubr.f32.gmra.mrb[38].mxu1 %v1449_v5 }
 0x19d   : > { %1914 = vmatprep.mubr.f32.mxu1 %v1454_v6 }
 0x1a0   : > { %1915 = vmatmul.mubr.f32.gmra.mrb[40].mxu1 %v1453_v61  ;;  %v1350_v61 = vld [vmem:[%s5579_s4 + $0x68] sm:$0xff] }
 0x1a1   : > { %1918 = vmatprep.mubr.f32.mxu1 %v1458_v7  ;;  %1807 = vmatprep.mubr.f32.mxu0 %v1350_v61  ;;  %v1349_v7 = vld [vmem:[%s5579_s4 + $0x60] sm:$0xff] }
 0x1a2   : > { %1808 = vmatmul.mubr.f32.gmra.mrb[56].mxu0 %v1349_v7 }
 0x1a4   : > { %1919 = vmatmul.mubr.f32.gmra.mrb[42].mxu1 %v1457_v8  ;;  %v1354_v8 = vld [vmem:[%s5579_s4 + $0x88] sm:$0xff] }
 0x1a5   : > { %1922 = vmatprep.mubr.f32.mxu1 %v1462_v9  ;;  %1811 = vmatprep.mubr.f32.mxu0 %v1354_v8 }
 0x1a8   : > { %1923 = vmatmul.mubr.f32.gmra.mrb[44].mxu1 %v1461_v62  ;;  %v1353_v62 = vld [vmem:[%s5579_s4 + $0x80] sm:$0xff] }
 0x1a9   : > { %3338 = vmatprep.mubr.msk.f32.mxu1 %vm1631_vm1, %v1340_v10  ;;  %1812 = vmatmul.mubr.f32.gmra.mrb[58].mxu0 %v1353_v62 }
 0x1ac   : > { %1992 = vmatmul.mubr.f32.vlgmr.msra.gmra.mrb[46].mxu1 %v1339_v12  ;;  %v1358_v12 = vld [vmem:[%s5579_s4 + $0xa8] sm:$0xff] }
 0x1ad   : > { %3339 = vmatprep.mubr.msk.f32.mxu1 %vm1631_vm1, %v1344_v13  ;;  %v1357_v13 = vld [vmem:[%s5579_s4 + $0xa0] sm:$0xff]  ;;  %1815 = vmatprep.mubr.f32.mxu0 %v1358_v12 }
 0x1ae   : > { %1816 = vmatmul.mubr.f32.gmra.mrb[60].mxu0 %v1357_v13 }
 0x1b0   : > { %1997 = vmatmul.mubr.f32.gmra.mrb[48].mxu1 %v1343_v15  ;;  %v1362_v15 = vld [vmem:[%s5579_s4 + $0xc8] sm:$0xff] }
 0x1b1   : > { %3340 = vmatprep.mubr.msk.f32.mxu1 %vm1631_vm1, %v1348_v63  ;;  %1819 = vmatprep.mubr.f32.mxu0 %v1362_v15 }
 0x1b4   : > { %2002 = vmatmul.mubr.f32.gmra.mrb[50].mxu1 %v1347_v16 }
 0x1b5   : > { %3341 = vmatprep.mubr.msk.f32.mxu1 %vm1631_vm1, %v1352_v17  ;;  %v1361_v17 = vld [vmem:[%s5579_s4 + $0xc0] sm:$0xff] }
 0x1b6   : > { %1820 = vmatmul.mubr.f32.gmra.mrb[62].mxu0 %v1361_v17 }
 0x1b8   : > { %2007 = vmatmul.mubr.f32.gmra.mrb[52].mxu1 %v1351_v18  ;;  %v1366_v18 = vld [vmem:[%s5579_s4 + $0xe8] sm:$0xff] }
 0x1b9   : > { %3342 = vmatprep.mubr.msk.f32.mxu1 %vm1631_vm1, %v1356_v0  ;;  %1823 = vmatprep.mubr.f32.mxu0 %v1366_v18 }
 0x1bc   : > { %2011 = vmatmul.mubr.f32.gmra.mrb[54].mxu1 %v1355_v19 }
 0x1bd   : > { %3343 = vmatprep.mubr.msk.f32.mxu1 %vm1631_vm1, %v1360_v20  ;;  %v1365_v20 = vld [vmem:[%s5579_s4 + $0xe0] sm:$0xff] }
 0x1be   : > { %1824 = vmatmul.mubr.f32.gmra.mrb[64].mxu0 %v1365_v20 }
 0x1c0   : > { %2015 = vmatmul.mubr.f32.gmra.mrb[56].mxu1 %v1359_v2  ;;  %v1370_v2 = vld [vmem:[%s5579_s4 + $0x108] sm:$0xff] }
 0x1c1   : > { %3344 = vmatprep.mubr.msk.f32.mxu1 %vm1631_vm1, %v1364_v21  ;;  %1827 = vmatprep.mubr.f32.mxu0 %v1370_v2 }
 0x1c4   : > { %2019 = vmatmul.mubr.f32.gmra.mrb[58].mxu1 %v1363_v22 }
 0x1c5   : > { %3345 = vmatprep.mubr.msk.f32.mxu1 %vm1631_vm1, %v1368_v24 }
 0x1c8   : > { %2023 = vmatmul.mubr.f32.gmra.mrb[60].mxu1 %v1367_v25  ;;  %v1369_v25 = vld [vmem:[%s5579_s4 + $0x100] sm:$0xff] }
 0x1c9   : > { %3346 = vmatprep.mubr.msk.f32.mxu1 %vm1631_vm1, %v1372_v11  ;;  %1828 = vmatmul.mubr.f32.gmra.mrb[66].mxu0 %v1369_v25 }
 0x1cc   : > { %2027 = vmatmul.mubr.f32.gmra.mrb[62].mxu1 %v1371_v27 }
 0x1cd   : > { %3347 = vmatprep.mubr.msk.f32.mxu1 %vm1631_vm1, %v1376_v28  ;;  %v2144_v28 = vld [vmem:[%s5581_s6] sm:$0xff] }
 0x1ce   : > { %3656 = vmatprep.mubr.msk.f32.mxu0 %vm2494_vm2, %v2144_v28 }
 0x1d0   : > { %2031 = vmatmul.mubr.f32.gmra.mrb[64].mxu1 %v1375_v29 }
 0x1d1   : > { %3348 = vmatprep.mubr.msk.f32.mxu1 %vm1631_vm1, %v1380_v30 }
 0x1d4   : > { %2035 = vmatmul.mubr.f32.gmra.mrb[66].mxu1 %v1379_v31 }
 0x1d5   : > { %3349 = vmatprep.mubr.msk.f32.mxu1 %vm1631_vm1, %v1384_v14 }
 0x1d8   : > { %2039 = vmatmul.mubr.f32.gmra.mrb[68].mxu1 %v1383_v32 }
 0x1d9   : > { %3350 = vmatprep.mubr.msk.f32.mxu1 %vm1631_vm1, %v1388_v33 }
 0x1dc   : > { %2043 = vmatmul.mubr.f32.gmra.mrb[70].mxu1 %v1387_v23 }
 0x1dd   : > { %3351 = vmatprep.mubr.msk.f32.mxu1 %vm1631_vm1, %v1392_v34 }
 0x1e0   : > { %2047 = vmatmul.mubr.f32.gmra.mrb[72].mxu1 %v1391_v35 }
 0x1e1   : > { %3352 = vmatprep.mubr.msk.f32.mxu1 %vm1631_vm1, %v1396_v37 }
 0x1e4   : > { %2051 = vmatmul.mubr.f32.gmra.mrb[74].mxu1 %v1395_v38 }
 0x1e5   : > { %3353 = vmatprep.mubr.msk.f32.mxu1 %vm1631_vm1, %v1400_v26  ;;  %v1567_v26 = vpop.permute.xlu0 %1566 }
 0x1e8   : > { %2055 = vmatmul.mubr.f32.gmra.mrb[76].mxu1 %v1399_v40  ;;  %v1572_v40 = vpop.permute.xlu1 %1571 }
 0x1e9   : > { %3354 = vmatprep.mubr.msk.f32.mxu1 %vm1631_vm1, %v1404_v41 }
 0x1ec   : > { %2059 = vmatmul.mubr.f32.gmra.mrb[14].mxu1 %v1403_v42 }
 0x1ed   : > { %3355 = vmatprep.mubr.msk.f32.mxu1 %vm1631_vm1, %v1408_v36  ;;  %v1577_v36 = vpop.permute.xlu0 %1576 }
 0x1f0   : > { %2064 = vmatmul.mubr.f32.gmra.mrb[16].mxu1 %v1407_v43 }
 0x1f1   : > { %3356 = vmatprep.mubr.msk.f32.mxu1 %vm1631_vm1, %v1412_v44 }
 0x1f4   : > { %2069 = vmatmul.mubr.f32.gmra.mrb[18].mxu1 %v1411_v45  ;;  %v1500_v45 = vpop.permute.xlu1 %1499 }
 0x223   : > { %v5087_v39 = vpop.f32.mrb[50].mxu0  ;;  %v1833_v46 = vpop.f32.mrb[0].mxu1 }
 0x224   : > { %v1834_v47 = vpop.f32.mrb[1].mxu1  ;;  %v1796_v48 = vpop.f32.mrb[51].mxu0  ;;  %v1795_v46 = vadd.f32 %v5087_v39, %v1500_v45 }
 0x227   : > { %v5089_v49 = vpop.f32.mrb[52].mxu0  ;;  %v1837_v50 = vpop.f32.mrb[2].mxu1 }
 0x228   : > { %v1838_v52 = vpop.f32.mrb[3].mxu1  ;;  %v1801_v53 = vpop.f32.mrb[53].mxu0 }
 0x229   : > { %v1505_v52 = vpop.permute.xlu0 %1504 }
 0x22a   : > { %v1800_v53 = vadd.f32 %v5089_v49, %v1505_v52 }
 0x22b   : > { %v5091_v55 = vpop.f32.mrb[54].mxu0  ;;  %v1841_v51 = vpop.f32.mrb[4].mxu1 }
 0x22c   : > { %v1842_v56 = vpop.f32.mrb[5].mxu1  ;;  %v1806_v57 = vpop.f32.mrb[55].mxu0 }
 0x22f   : > { %v1845_v58 = vpop.f32.mrb[6].mxu1 }
 0x230   : > { %v1846_v59 = vpop.f32.mrb[7].mxu1  ;;  %v1510_v58 = vpop.permute.xlu1 %1509 }
 0x231   : > { %v1805_v59 = vadd.f32 %v5091_v55, %v1510_v58  ;;  %v2149_v58 = vld [vmem:[%s5581_s6 + $0x28] sm:$0xff] }
 0x233   : > { %v1849_v1 = vpop.f32.mrb[8].mxu1 }
 0x234   : > { %v1850_v3 = vpop.f32.mrb[9].mxu1 }
 0x237   : > { %v1853_v60 = vpop.f32.mrb[10].mxu1 }
 0x238   : > { %v1854_v4 = vpop.f32.mrb[11].mxu1 }
 0x23b   : > { %v1857_v5 = vpop.f32.mrb[12].mxu1 }
 0x23c   : > { %v1858_v6 = vpop.f32.mrb[13].mxu1 }
 0x24b   : > { %v1876_v9 = vpop.f32.mrb[20].mxu1 }
 0x24c   : > { %v1877_v10 = vpop.f32.mrb[21].mxu1 }
 0x24f   : > { %v1880_v63 = vpop.f32.mrb[22].mxu1 }
 0x250   : > { %v1881_v16 = vpop.f32.mrb[23].mxu1 }
 0x253   : > { %v1884_v0 = vpop.f32.mrb[24].mxu1 }
 0x254   : > { %v1885_v19 = vpop.f32.mrb[25].mxu1 }
 0x257   : > { %v1888_v21 = vpop.f32.mrb[26].mxu1 }
 0x258   : > { %v1889_v22 = vpop.f32.mrb[27].mxu1 }
 0x25b   : > { %v1892_v24 = vpop.f32.mrb[28].mxu1 }
 0x25c   : > { %v1893_v11 = vpop.f32.mrb[29].mxu1 }
 0x25f   : > { %v1896_v27 = vpop.f32.mrb[30].mxu1 }
 0x260   : > { %v1897_v29 = vpop.f32.mrb[31].mxu1 }
 0x263   : > { %v1900_v30 = vpop.f32.mrb[32].mxu1 }
 0x264   : > { %v1901_v31 = vpop.f32.mrb[33].mxu1 }
 0x267   : > { %v1904_v14 = vpop.f32.mrb[34].mxu1 }
 0x268   : > { %v1905_v32 = vpop.f32.mrb[35].mxu1 }
 0x26b   : > { %v1908_v33 = vpop.f32.mrb[36].mxu1 }
 0x26c   : > { %v1909_v23 = vpop.f32.mrb[37].mxu1 }
 0x26f   : > { %v1912_v34 = vpop.f32.mrb[38].mxu1 }
 0x270   : > { %v1913_v35 = vpop.f32.mrb[39].mxu1 }
 0x273   : > { %v1916_v37 = vpop.f32.mrb[40].mxu1 }
 0x274   : > { %v1917_v38 = vpop.f32.mrb[41].mxu1 }
 0x277   : > { %v1920_v41 = vpop.f32.mrb[42].mxu1 }
 0x278   : > { %v1921_v42 = vpop.f32.mrb[43].mxu1  ;;  %v2126_v41 = vld [vmem:[%s429_s19] sm:$0xff] }
 0x27b   : > { %v1924_v43 = vpop.f32.mrb[44].mxu1 }
 0x27c   : > { %v1925_v44 = vpop.f32.mrb[45].mxu1  ;;  %v2127_v43 = vld [vmem:[%s429_s19 + $0x8] sm:$0xff] }
 0x27f   : > { %v1993_v47 = vpop.f32.mrb[46].mxu1 }
 0x280   : > { %v1994_v48 = vadd.f32 %v1993_v47, %v1795_v46  ;;  %v1995_v50 = vpop.f32.mrb[47].mxu1  ;;  %v2128_v46 = vld [vmem:[%s429_s19 + $0x10] sm:$0xf]  ;;  %s466_s19 = scalar_lea.vmem [#allocation5], %s4170_s13 }
 0x281   : > { %s3201_s14 = sshll.u32 %s466_s19, 4  ;;  %s5533_s14 = int_to_ptr.vmem [resolvable:$true] %s3201_s14 }
 0x282   : > { %s3969_s29 = scalar_lea.vmem %s5533_s14, 16  ;;  %p3976_p2 = scmp.lt.s32.totalorder %s5533_s14, %s3974_s24 }
 0x283   : > { %v1998_v51 = vpop.f32.mrb[48].mxu1  ;;  %p3970_p13 = scmp.ne.s32.totalorder %s5533_s14, %s3969_s29  ;;  %p3977_p3 = scmp.lt.s32.totalorder %s3975_s30, %s3969_s29 }
 0x284   : > { %v1999_v56 = vadd.f32 %v1998_v51, %v1800_v53  ;;  %v2000_v57 = vpop.f32.mrb[49].mxu1  ;;  %v2145_v51 = vld [vmem:[%s5581_s6 + $0x8] sm:$0xff] }
 0x285   : > { %v2148_v57 = vld [vmem:[%s5581_s6 + $0x20] sm:$0xff]  ;;  %p3971_p0 = pnand %p3970_p13, %p4136_p6  ;;  %p3978_p4 = por %p3977_p3, %p3976_p2 }
 0x287   : > { %v2003_v1 = vpop.f32.mrb[50].mxu1  ;;  %p3972_p1 = pneg %p3971_p0 }
 0x288   : > { %v2004_v3 = vadd.f32 %v2003_v1, %v1805_v59  ;;  %v2005_v60 = vpop.f32.mrb[51].mxu1  ;;  %v2150_v59 = vld [vmem:[%s5581_s6 + $0x30] sm:$0xff]  ;;  %v2151_v1 = vld [vmem:[%s5581_s6 + $0x38] sm:$0xff] }
 0x289   : > { %v2153_v60 = vld [vmem:[%s5581_s6 + $0x48] sm:$0xff]  ;;  %p3979_p5 = pnand %p3978_p4, %p3972_p1 }
 0x28b   : > { %v2008_v4 = vpop.f32.mrb[52].mxu1 }
 0x28c   : > { %v2009_v5 = vpop.f32.mrb[53].mxu1  ;;  %v2154_v4 = vld [vmem:[%s5581_s6 + $0x50] sm:$0xff] }
 0x28d   : > { %v2155_v5 = vld [vmem:[%s5581_s6 + $0x58] sm:$0xff] }
 0x28f   : > { %v2012_v6 = vpop.f32.mrb[54].mxu1 }
 0x290   : > { %v2013_v61 = vpop.f32.mrb[55].mxu1  ;;  %v2156_v6 = vld [vmem:[%s5581_s6 + $0x60] sm:$0xff] }
 0x291   : > { %v2157_v61 = vld [vmem:[%s5581_s6 + $0x68] sm:$0xff] }
 0x293   : > { %v2016_v39 = vpop.f32.mrb[56].mxu1 }
 0x294   : > { %v2017_v7 = vpop.f32.mrb[57].mxu1  ;;  %v2158_v39 = vld [vmem:[%s5581_s6 + $0x70] sm:$0xff] }
 0x295   : > { %v2159_v7 = vld [vmem:[%s5581_s6 + $0x78] sm:$0xff] }
 0x297   : > { %v2020_v8 = vpop.f32.mrb[58].mxu1 }
 0x298   : > { %v2021_v9 = vpop.f32.mrb[59].mxu1  ;;  %v2160_v8 = vld [vmem:[%s5581_s6 + $0x80] sm:$0xff] }
 0x299   : > { %v2161_v9 = vld [vmem:[%s5581_s6 + $0x88] sm:$0xff] }
 0x29b   : > { %v2024_v62 = vpop.f32.mrb[60].mxu1 }
 0x29c   : > { %v2025_v10 = vpop.f32.mrb[61].mxu1  ;;  %v2162_v62 = vld [vmem:[%s5581_s6 + $0x90] sm:$0xff] }
 0x29d   : > { %v2163_v10 = vld [vmem:[%s5581_s6 + $0x98] sm:$0xff] }
 0x29f   : > { %v2028_v49 = vpop.f32.mrb[62].mxu1 }
 0x2a0   : > { %v2029_v12 = vpop.f32.mrb[63].mxu1  ;;  %v2164_v49 = vld [vmem:[%s5581_s6 + $0xa0] sm:$0xff] }
 0x2a1   : > { %v2165_v12 = vld [vmem:[%s5581_s6 + $0xa8] sm:$0xff] }
 0x2a3   : > { %v2032_v13 = vpop.f32.mrb[64].mxu1 }
 0x2a4   : > { %v2033_v15 = vpop.f32.mrb[65].mxu1  ;;  %v2166_v13 = vld [vmem:[%s5581_s6 + $0xb0] sm:$0xff] }
 0x2a5   : > { %v2167_v15 = vld [vmem:[%s5581_s6 + $0xb8] sm:$0xff] }
 0x2a7   : > { %v2036_v63 = vpop.f32.mrb[66].mxu1 }
 0x2a8   : > { %v2037_v16 = vpop.f32.mrb[67].mxu1  ;;  %v2168_v63 = vld [vmem:[%s5581_s6 + $0xc0] sm:$0xff] }
 0x2a9   : > { %v2169_v16 = vld [vmem:[%s5581_s6 + $0xc8] sm:$0xff] }
 0x2ab   : > { %v2040_v55 = vpop.f32.mrb[68].mxu1 }
 0x2ac   : > { %v2041_v17 = vpop.f32.mrb[69].mxu1  ;;  %v2170_v55 = vld [vmem:[%s5581_s6 + $0xd0] sm:$0xff] }
 0x2ad   : > { %v2171_v17 = vld [vmem:[%s5581_s6 + $0xd8] sm:$0xff] }
 0x2af   : > { %v2044_v18 = vpop.f32.mrb[70].mxu1 }
 0x2b0   : > { %v2045_v0 = vpop.f32.mrb[71].mxu1  ;;  %v2172_v18 = vld [vmem:[%s5581_s6 + $0xe0] sm:$0xff] }
 0x2b1   : > { %v2173_v0 = vld [vmem:[%s5581_s6 + $0xe8] sm:$0xff] }
 0x2b3   : > { %v2048_v19 = vpop.f32.mrb[72].mxu1 }
 0x2b4   : > { %v2049_v20 = vpop.f32.mrb[73].mxu1  ;;  %v2174_v19 = vld [vmem:[%s5581_s6 + $0xf0] sm:$0xff] }
 0x2b5   : > { %v2175_v20 = vld [vmem:[%s5581_s6 + $0xf8] sm:$0xff] }
 0x2b7   : > { %v2052_v2 = vpop.f32.mrb[74].mxu1 }
 0x2b8   : > { %v2053_v21 = vpop.f32.mrb[75].mxu1  ;;  %v2176_v2 = vld [vmem:[%s5581_s6 + $0x100] sm:$0xff] }
 0x2b9   : > { %v1809_v21 = vpop.f32.mrb[56].mxu0 }
 0x2ba   : > { %v1452_v21 = vld [vmem:[%s5579_s4 + $0x398] sm:$0xff] }
 0x2bb   : > { %v2056_v22 = vpop.f32.mrb[76].mxu1 }
 0x2bc   : > { %v2057_v24 = vpop.f32.mrb[77].mxu1  ;;  %v1810_v22 = vpop.f32.mrb[57].mxu0 }
 0x2bd   : > { %v2177_v24 = vld [vmem:[%s5581_s6 + $0x108] sm:$0xff] }
 0x2bf   : > { %v2060_v25 = vpop.f32.mrb[14].mxu1 }
 0x2c0   : > { %v3909_v11 = vadd.f32 %v2060_v25, %v1567_v26  ;;  %v2062_v27 = vpop.f32.mrb[15].mxu1  ;;  %v2178_v25 = vld [vmem:[%s5581_s6 + $0x110] sm:$0xff] }
 0x2c2   : > { %v2129_v28 = vmul.f32 0.5, %v3909_v11  ;;  %v1813_v11 = vpop.f32.mrb[58].mxu0 }
 0x2c3   : > { %v2065_v29 = vpop.f32.mrb[16].mxu1  ;;  %v1814_v27 = vpop.f32.mrb[59].mxu0  ;;  %v1455_v11 = vld [vmem:[%s5579_s4 + $0x3b0] sm:$0xff] }
 0x2c4   : > { %v2132_v30 = vmul.f32 1.442695, %v2129_v28  ;;  %v3910_v31 = vadd.f32 %v2065_v29, %v1572_v40  ;;  %v2067_v14 = vpop.f32.mrb[17].mxu1  ;;  %v2179_v28 = vld [vmem:[%s5581_s6 + $0x118] sm:$0xff]  ;;  %v2180_v29 = vld [vmem:[%s5581_s6 + $0x120] sm:$0xff] }
 0x2c5   : > { %v2181_v14 = vld [vmem:[%s5581_s6 + $0x128] sm:$0xff] }
 0x2c6   : > { %3963 = vpow2.f32 %v2132_v30  ;;  %v2130_v32 = vmul.f32 0.5, %v3910_v31  ;;  %v1817_v30 = vpop.f32.mrb[60].mxu0 }
 0x2c7   : > { %v2070_v33 = vpop.f32.mrb[18].mxu1  ;;  %v1818_v31 = vpop.f32.mrb[61].mxu0  ;;  %v1459_v30 = vld [vmem:[%s5579_s4 + $0x3d0] sm:$0xff] }
 0x2c8   : > { %v2134_v23 = vmul.f32 1.442695, %v2130_v32  ;;  %v3911_v34 = vadd.f32 %v2070_v33, %v1577_v36  ;;  %v2072_v35 = vpop.f32.mrb[19].mxu1  ;;  %v2182_v32 = vld [vmem:[%s5581_s6 + $0x130] sm:$0xff]  ;;  %v1821_v33 = vpop.f32.mrb[62].mxu0 }
 0x2c9   : > { %v2184_v35 = vld [vmem:[%s5581_s6 + $0x140] sm:$0xff] }
 0x2ca   : > { %3965 = vpow2.f32 %v2134_v23  ;;  %v2131_v37 = vmul.f32 0.5, %v3911_v34  ;;  %v1822_v23 = vpop.f32.mrb[63].mxu0  ;;  %v2183_v34 = vld [vmem:[%s5581_s6 + $0x138] sm:$0xff] }
 0x2cc   : > { %v2136_v38 = vmul.f32 1.442695, %v2131_v37  ;;  %v1825_v37 = vpop.f32.mrb[64].mxu0 }
 0x2ce   : > { %3967 = vpow2.f32 %v2136_v38  ;;  %v1826_v38 = vpop.f32.mrb[65].mxu0 }
 0x2d0   : > { %v3964_v26 = vpop.eup %3963 }
 0x2d1   : > { %v2138_v42 = vmul.f32 %v3964_v26, %v2126_v41  ;;  %v2185_v41 = vld [vmem:[%s5581_s6 + $0x148] sm:$0xff]  ;;  %v2186_v26 = vld [vmem:[%s5581_s6 + $0x150] sm:$0xff] }
 0x2d3   : > { %v2141_v44 = vadd.f32 %v2138_v42, %v1994_v48  ;;  %v2146_v48 = vld [vmem:[%s5581_s6 + $0x10] sm:$0xff]  ;;  %v1829_v42 = vpop.f32.mrb[66].mxu0 }
 0x2d4   : > { %v3966_v45 = vpop.eup %3965 }
 0x2d5   : > { %v2139_v40 = vmul.f32 %v3966_v45, %v2127_v43  ;;  %v1830_v43 = vpop.f32.mrb[67].mxu0  ;;  %v2188_v45 = vld [vmem:[%s5581_s6 + $0x160] sm:$0xff] }
 0x2d7   : > { %v2142_v47 = vadd.f32 %v2139_v40, %v1999_v56  ;;  %v2147_v56 = vld [vmem:[%s5581_s6 + $0x18] sm:$0xff]  ;;  %v2189_v40 = vld [vmem:[%s5581_s6 + $0x168] sm:$0xff] }
 0x2d8   : > { %v3968_v50 = vpop.eup %3967 }
 0x2d9   : > { %v3814_v52 = vpack.c.bf16 %v2142_v47, %v2141_v44  ;;  %v2140_v53 = vmul.f32 %v3968_v50, %v2128_v46  ;;  %v2187_v44 = vld [vmem:[%s5581_s6 + $0x158] sm:$0xff]  ;;  %v2190_v46 = vld [vmem:[%s5581_s6 + $0x170] sm:$0xff]  ;;  %v2192_v50 = vld [vmem:[%s5581_s6 + $0x180] sm:$0xff] }
 0x2da   : > { %v2191_v47 = vld [vmem:[%s5581_s6 + $0x178] sm:$0xff] }
 0x2db   : > { %3815 = vmatprep.subr.bf16.mxu0 %v3814_v52  ;;  %v2143_v36 = vadd.f32 %v2140_v53, %v2004_v3  ;;  %v2152_v3 = vld [vmem:[%s5581_s6 + $0x40] sm:$0xff]  ;;  %v1416_v53 = vld [vmem:[%s5579_s4 + $0x278] sm:$0xff] }
 0x2dc   : > { %3817 = vmatpush3.bf16.msra.mxu0 %v3814_v52  ;;  %v2193_v52 = vld [vmem:[%s5581_s6 + $0x188] sm:$0xff]  ;;  %3357 = vmatprep.mubr.msk.f32.mxu1 %vm1631_vm1, %v1416_v53 }
 0x2dd   : > { %3654 = vmatprep.subr.msk.mxu0 %vm2645_vm3, %v2143_v36 }
 0x2e0   : > { %3655 = vmatpush3.msk.msra.mxu0 %vm2645_vm3, %v2143_v36  ;;  %v3021_v36 = vlaneseq }
 0x2e1   : > { %3657 = vmatmul.mubr.msk.f32.vlgmr.msra.gmra.mrb[68].mxu0 %vm2494_vm2, %v2145_v51  ;;  %v1415_v51 = vld [vmem:[%s5579_s4 + $0x270] sm:$0xff] }
 0x2e2   : > { %3659 = vmatprep.mubr.msk.f32.mxu0 %vm2494_vm2, %v2146_v48  ;;  %2074 = vmatmul.mubr.f32.gmra.mrb[78].mxu1 %v1415_v51  ;;  %v1420_v48 = vld [vmem:[%s5579_s4 + $0x298] sm:$0xff] }
 0x2e3   : > { %3358 = vmatprep.mubr.msk.f32.mxu1 %vm1631_vm1, %v1420_v48 }
 0x2e5   : > { %3660 = vmatmul.mubr.msk.f32.gmra.mrb[70].mxu0 %vm2494_vm2, %v2147_v56  ;;  %v5343_v56 = vshrl.u32 %v3021_v36, 7 }
 0x2e6   : > { %3662 = vmatprep.mubr.msk.f32.mxu0 %vm2494_vm2, %v2148_v57  ;;  %v1419_v57 = vld [vmem:[%s5579_s4 + $0x290] sm:$0xff] }
 0x2e7   : > { %2078 = vmatmul.mubr.f32.gmra.mrb[80].mxu1 %v1419_v57 }
 0x2e9   : > { %3663 = vmatmul.mubr.msk.f32.gmra.mrb[72].mxu0 %vm2494_vm2, %v2149_v58  ;;  %v5349_v58 = vpop.permute.xlu1 %2331 }
 0x2ea   : > { %3665 = vmatprep.mubr.msk.f32.mxu0 %vm2494_vm2, %v2150_v59  ;;  %v5354_v59 = vld [vmem:[%s5583_s8] sm:$0xf] }
 0x2ed   : > { %3666 = vmatmul.mubr.msk.f32.gmra.mrb[74].mxu0 %vm2494_vm2, %v2151_v1  ;;  %v5356_v1 = vpop.permute.xlu0 %2326 }
 0x2ee   : > { %3668 = vmatprep.mubr.msk.f32.mxu0 %vm2494_vm2, %v2152_v3  ;;  %v3032_v3 = vsub.s32 1, %v5343_v56 }
 0x2f1   : > { %3669 = vmatmul.mubr.msk.f32.gmra.mrb[76].mxu0 %vm2494_vm2, %v2153_v60  ;;  %v1424_v60 = vld [vmem:[%s5579_s4 + $0x2b8] sm:$0xff] }
 0x2f2   : > { %3671 = vmatprep.mubr.msk.f32.mxu0 %vm2494_vm2, %v2154_v4  ;;  %v3033_v4 = vrot.slane %v5354_v59, %v3032_v3  ;;  %3359 = vmatprep.mubr.msk.f32.mxu1 %vm1631_vm1, %v1424_v60 }
 0x2f5   : > { %3672 = vmatmul.mubr.msk.f32.gmra.mrb[78].mxu0 %vm2494_vm2, %v2155_v5  ;;  %v1423_v5 = vld [vmem:[%s5579_s4 + $0x2b0] sm:$0xff] }
 0x2f6   : > { %3674 = vmatprep.mubr.msk.f32.mxu0 %vm2494_vm2, %v2156_v6  ;;  %2082 = vmatmul.mubr.f32.gmra.mrb[82].mxu1 %v1423_v5  ;;  %v2252_v6 = vpop.permute.xlu1 %2251 }
 0x2f9   : > { %3675 = vmatmul.mubr.msk.f32.gmra.mrb[80].mxu0 %vm2494_vm2, %v2157_v61  ;;  %v1428_v61 = vld [vmem:[%s5579_s4 + $0x2d8] sm:$0xff] }
 0x2fa   : > { %3677 = vmatprep.mubr.msk.f32.mxu0 %vm2494_vm2, %v2158_v39  ;;  %v2247_v39 = vpop.permute.xlu0 %2246  ;;  %3360 = vmatprep.mubr.msk.f32.mxu1 %vm1631_vm1, %v1428_v61 }
 0x2fd   : > { %3678 = vmatmul.mubr.msk.f32.gmra.mrb[82].mxu0 %vm2494_vm2, %v2159_v7  ;;  %v1427_v7 = vld [vmem:[%s5579_s4 + $0x2d0] sm:$0xff] }
 0x2fe   : > { %3680 = vmatprep.mubr.msk.f32.mxu0 %vm2494_vm2, %v2160_v8  ;;  %2086 = vmatmul.mubr.f32.gmra.mrb[84].mxu1 %v1427_v7  ;;  %v1432_v8 = vld [vmem:[%s5579_s4 + $0x2f8] sm:$0xff] }
 0x2ff   : > { %3361 = vmatprep.mubr.msk.f32.mxu1 %vm1631_vm1, %v1432_v8 }
 0x301   : > { %3681 = vmatmul.mubr.msk.f32.gmra.mrb[84].mxu0 %vm2494_vm2, %v2161_v9  ;;  %v1431_v9 = vld [vmem:[%s5579_s4 + $0x2f0] sm:$0xff] }
 0x302   : > { %3683 = vmatprep.mubr.msk.f32.mxu0 %vm2494_vm2, %v2162_v62  ;;  %v5381_v62 = vpop.permute.xlu1 %2341  ;;  %2090 = vmatmul.mubr.f32.gmra.mrb[86].mxu1 %v1431_v9 }
 0x305   : > { %3684 = vmatmul.mubr.msk.f32.gmra.mrb[86].mxu0 %vm2494_vm2, %v2163_v10  ;;  %v5383_v10 = vpop.permute.xlu0 %2336 }
 0x306   : > { %3686 = vmatprep.mubr.msk.f32.mxu0 %vm2494_vm2, %v2164_v49  ;;  %v1436_v49 = vld [vmem:[%s5579_s4 + $0x318] sm:$0xff] }
 0x307   : > { %3362 = vmatprep.mubr.msk.f32.mxu1 %vm1631_vm1, %v1436_v49 }
 0x309   : > { %3687 = vmatmul.mubr.msk.f32.gmra.mrb[88].mxu0 %vm2494_vm2, %v2165_v12  ;;  %v1435_v12 = vld [vmem:[%s5579_s4 + $0x310] sm:$0xff] }
 0x30a   : > { %3689 = vmatprep.mubr.msk.f32.mxu0 %vm2494_vm2, %v2166_v13  ;;  %2094 = vmatmul.mubr.f32.gmra.mrb[88].mxu1 %v1435_v12  ;;  %v2262_v13 = vpop.permute.xlu1 %2261 }
 0x30d   : > { %3690 = vmatmul.mubr.msk.f32.gmra.mrb[90].mxu0 %vm2494_vm2, %v2167_v15  ;;  %v1440_v15 = vld [vmem:[%s5579_s4 + $0x338] sm:$0xff] }
 0x30e   : > { %3692 = vmatprep.mubr.msk.f32.mxu0 %vm2494_vm2, %v2168_v63  ;;  %v2257_v63 = vpop.permute.xlu0 %2256  ;;  %3363 = vmatprep.mubr.msk.f32.mxu1 %vm1631_vm1, %v1440_v15 }
 0x311   : > { %3693 = vmatmul.mubr.msk.f32.gmra.mrb[92].mxu0 %vm2494_vm2, %v2169_v16  ;;  %v1439_v16 = vld [vmem:[%s5579_s4 + $0x330] sm:$0xff] }
 0x312   : > { %3695 = vmatprep.mubr.msk.f32.mxu0 %vm2494_vm2, %v2170_v55  ;;  %2098 = vmatmul.mubr.f32.gmra.mrb[90].mxu1 %v1439_v16  ;;  %v1444_v55 = vld [vmem:[%s5579_s4 + $0x358] sm:$0xff] }
 0x313   : > { %3364 = vmatprep.mubr.msk.f32.mxu1 %vm1631_vm1, %v1444_v55 }
 0x315   : > { %3696 = vmatmul.mubr.msk.f32.gmra.mrb[94].mxu0 %vm2494_vm2, %v2171_v17  ;;  %v1443_v17 = vld [vmem:[%s5579_s4 + $0x350] sm:$0xff] }
 0x316   : > { %3698 = vmatprep.mubr.msk.f32.mxu0 %vm2494_vm2, %v2172_v18  ;;  %v5406_v18 = vpop.permute.xlu1 %2351  ;;  %2102 = vmatmul.mubr.f32.gmra.mrb[92].mxu1 %v1443_v17 }
 0x319   : > { %3699 = vmatmul.mubr.msk.f32.gmra.mrb[96].mxu0 %vm2494_vm2, %v2173_v0  ;;  %v5408_v0 = vpop.permute.xlu0 %2346 }
 0x31a   : > { %3701 = vmatprep.mubr.msk.f32.mxu0 %vm2494_vm2, %v2174_v19  ;;  %v1448_v19 = vld [vmem:[%s5579_s4 + $0x378] sm:$0xff] }
 0x31b   : > { %3365 = vmatprep.mubr.msk.f32.mxu1 %vm1631_vm1, %v1448_v19 }
 0x31d   : > { %3702 = vmatmul.mubr.msk.f32.gmra.mrb[98].mxu0 %vm2494_vm2, %v2175_v20  ;;  %v1447_v20 = vld [vmem:[%s5579_s4 + $0x370] sm:$0xff]  ;;  %v2267_v22 = vpop.permute.xlu0 %2266 }
 0x31e   : > { %3704 = vmatprep.mubr.msk.f32.mxu0 %vm2494_vm2, %v2176_v2  ;;  %2106 = vmatmul.mubr.f32.gmra.mrb[94].mxu1 %v1447_v20  ;;  %v2272_v2 = vpop.permute.xlu1 %2271 }
 0x31f   : > { %3366 = vmatprep.mubr.msk.f32.mxu1 %vm1631_vm1, %v1452_v21 }
 0x321   : > { %3705 = vmatmul.mubr.msk.f32.gmra.mrb[100].mxu0 %vm2494_vm2, %v2177_v24  ;;  %v1451_v24 = vld [vmem:[%s5579_s4 + $0x390] sm:$0xff] }
 0x322   : > { %3707 = vmatprep.mubr.msk.f32.mxu0 %vm2494_vm2, %v2178_v25  ;;  %2110 = vmatmul.mubr.f32.gmra.mrb[96].mxu1 %v1451_v24  ;;  %v1456_v25 = vld [vmem:[%s5579_s4 + $0x3b8] sm:$0xff]  ;;  %v5431_v27 = vpop.permute.xlu1 %2361 }
 0x323   : > { %3367 = vmatprep.mubr.msk.f32.mxu1 %vm1631_vm1, %v1456_v25 }
 0x325   : > { %3708 = vmatmul.mubr.msk.f32.gmra.mrb[102].mxu0 %vm2494_vm2, %v2179_v28  ;;  %v5433_v28 = vpop.permute.xlu0 %2356 }
 0x326   : > { %3710 = vmatprep.mubr.msk.f32.mxu0 %vm2494_vm2, %v2180_v29  ;;  %2114 = vmatmul.mubr.f32.gmra.mrb[98].mxu1 %v1455_v11  ;;  %v1460_v29 = vld [vmem:[%s5579_s4 + $0x3d8] sm:$0xff]  ;;  %v2282_v31 = vpop.permute.xlu1 %2281 }
 0x327   : > { %3368 = vmatprep.mubr.msk.f32.mxu1 %vm1631_vm1, %v1460_v29 }
 0x329   : > { %3711 = vmatmul.mubr.msk.f32.gmra.mrb[104].mxu0 %vm2494_vm2, %v2181_v14  ;;  %v1464_v14 = vld [vmem:[%s5579_s4 + $0x3f8] sm:$0xff]  ;;  %v2277_v33 = vpop.permute.xlu0 %2276 }
 0x32a   : > { %3713 = vmatprep.mubr.msk.f32.mxu0 %vm2494_vm2, %v2182_v32  ;;  %2118 = vmatmul.mubr.f32.gmra.mrb[100].mxu1 %v1459_v30  ;;  %v1463_v32 = vld [vmem:[%s5579_s4 + $0x3f0] sm:$0xff]  ;;  %v5449_v23 = vpop.permute.xlu1 %2371 }
 0x32b   : > { %3369 = vmatprep.mubr.msk.f32.mxu1 %vm1631_vm1, %v1464_v14 }
 0x32d   : > { %3714 = vmatmul.mubr.msk.f32.gmra.mrb[106].mxu0 %vm2494_vm2, %v2183_v34  ;;  %v5451_v34 = vpop.permute.xlu0 %2366 }
 0x32e   : > { %3716 = vmatprep.mubr.msk.f32.mxu0 %vm2494_vm2, %v2184_v35  ;;  %2122 = vmatmul.mubr.f32.gmra.mrb[102].mxu1 %v1463_v32  ;;  %v2292_v35 = vpop.permute.xlu1 %2291 }
 0x331   : > { %3717 = vmatmul.mubr.msk.f32.gmra.mrb[108].mxu0 %vm2494_vm2, %v2185_v41  ;;  %v2287_v37 = vpop.permute.xlu0 %2286 }
 0x332   : > { %3719 = vmatprep.mubr.msk.f32.mxu0 %vm2494_vm2, %v2186_v26  ;;  %v5453_v38 = vpop.permute.xlu1 %2381 }
 0x335   : > { %3720 = vmatmul.mubr.msk.f32.gmra.mrb[110].mxu0 %vm2494_vm2, %v2187_v44  ;;  %v5455_v41 = vpop.permute.xlu0 %2376 }
 0x336   : > { %3722 = vmatprep.mubr.msk.f32.mxu0 %vm2494_vm2, %v2188_v45 }
 0x339   : > { %3723 = vmatmul.mubr.msk.f32.gmra.mrb[112].mxu0 %vm2494_vm2, %v2189_v40  ;;  %v2302_v40 = vpop.permute.xlu1 %2301 }
 0x33a   : > { %3725 = vmatprep.mubr.msk.f32.mxu0 %vm2494_vm2, %v2190_v46 }
 0x33d   : > { %3726 = vmatmul.mubr.msk.f32.gmra.mrb[114].mxu0 %vm2494_vm2, %v2191_v47  ;;  %v5459_v5 = vpop.permute.xlu1 %2391 }
 0x33e   : > { %3728 = vmatprep.mubr.msk.f32.mxu0 %vm2494_vm2, %v2192_v50  ;;  %v2297_v50 = vpop.permute.xlu0 %2296 }
 0x341   : > { %3729 = vmatmul.mubr.msk.f32.gmra.mrb[116].mxu0 %vm2494_vm2, %v2193_v52  ;;  %v2312_v16 = vpop.permute.xlu1 %2311 }
 0x342   : > { %3111 = vmatprep.mubr.f32.mxu0 %v3033_v4 }
 0x3b4   : > { %v3658_v26 = vpop.f32.mrb[68].mxu0 }
 0x3b5   : > { %v2721_v42 = vadd.f32 %v3658_v26, %v2252_v6  ;;  %v2715_v43 = vpop.f32.mrb[69].mxu0 }
 0x3b6   : > { %v2716_v44 = vadd.f32 %v2715_v43, %v2247_v39  ;;  %v5463_v39 = vpop.permute.xlu0 %2386 }
 0x3b7   : > { %v2965_v45 = vmax.f32 %v2721_v42, 0.0 }
 0x3b8   : > { %v2964_v46 = vmax.f32 %v2716_v44, 0.0  ;;  %v3661_v47 = vpop.f32.mrb[70].mxu0 }
 0x3b9   : > { %v2731_v52 = vadd.f32 %v3661_v47, %v2262_v13  ;;  %v2725_v53 = vpop.f32.mrb[71].mxu0 }
 0x3ba   : > { %v5457_v36 = vpack.c.bf16 %v2965_v45, %v2964_v46  ;;  %v2726_v51 = vadd.f32 %v2725_v53, %v2257_v63  ;;  %v2307_v19 = vpop.permute.xlu0 %2306 }
 0x3bb   : > { %v2967_v48 = vmax.f32 %v2731_v52, 0.0 }
 0x3bc   : > { %v2966_v57 = vmax.f32 %v2726_v51, 0.0  ;;  %v3664_v3 = vpop.f32.mrb[72].mxu0 }
 0x3bd   : > { %v2741_v60 = vadd.f32 %v3664_v3, %v2272_v2  ;;  %v2735_v4 = vpop.f32.mrb[73].mxu0 }
 0x3be   : > { %v5461_v6 = vpack.c.bf16 %v2967_v48, %v2966_v57  ;;  %v2736_v61 = vadd.f32 %v2735_v4, %v2267_v22 }
 0x3bf   : > { %v2969_v7 = vmax.f32 %v2741_v60, 0.0 }
 0x3c0   : > { %v2968_v8 = vmax.f32 %v2736_v61, 0.0  ;;  %v3667_v9 = vpop.f32.mrb[74].mxu0 }
 0x3c1   : > { %v2751_v49 = vadd.f32 %v3667_v9, %v2282_v31  ;;  %v2745_v12 = vpop.f32.mrb[75].mxu0  ;;  %v5469_v31 = vpop.permute.xlu1 %2401 }
 0x3c2   : > { %v5465_v13 = vpack.c.bf16 %v2969_v7, %v2968_v8  ;;  %v2746_v15 = vadd.f32 %v2745_v12, %v2277_v33  ;;  %v5473_v33 = vpop.permute.xlu0 %2396 }
 0x3c3   : > { %v2971_v63 = vmax.f32 %v2751_v49, 0.0 }
 0x3c4   : > { %v2970_v55 = vmax.f32 %v2746_v15, 0.0  ;;  %v3670_v17 = vpop.f32.mrb[76].mxu0 }
 0x3c5   : > { %v2761_v20 = vadd.f32 %v3670_v17, %v2292_v35  ;;  %v2755_v2 = vpop.f32.mrb[77].mxu0  ;;  %v2322_v47 = vpop.permute.xlu1 %2321 }
 0x3c6   : > { %v5467_v21 = vpack.c.bf16 %v2971_v63, %v2970_v55  ;;  %v2756_v22 = vadd.f32 %v2755_v2, %v2287_v37  ;;  %v2317_v53 = vpop.permute.xlu0 %2316 }
 0x3c7   : > { %v2973_v24 = vmax.f32 %v2761_v20, 0.0 }
 0x3c8   : > { %v2972_v25 = vmax.f32 %v2756_v22, 0.0  ;;  %v3673_v11 = vpop.f32.mrb[78].mxu0 }
 0x3c9   : > { %v2771_v29 = vadd.f32 %v3673_v11, %v2302_v40  ;;  %v2765_v30 = vpop.f32.mrb[79].mxu0 }
 0x3ca   : > { %v5471_v14 = vpack.c.bf16 %v2973_v24, %v2972_v25  ;;  %v2766_v32 = vadd.f32 %v2765_v30, %v2297_v50 }
 0x3cb   : > { %v2975_v26 = vmax.f32 %v2771_v29, 0.0 }
 0x3cc   : > { %v2974_v42 = vmax.f32 %v2766_v32, 0.0  ;;  %v3676_v43 = vpop.f32.mrb[80].mxu0 }
 0x3cd   : > { %v2781_v35 = vadd.f32 %v3676_v43, %v2312_v16  ;;  %v2775_v44 = vpop.f32.mrb[81].mxu0 }
 0x3ce   : > { %v5475_v45 = vpack.c.bf16 %v2975_v26, %v2974_v42  ;;  %v2776_v37 = vadd.f32 %v2775_v44, %v2307_v19 }
 0x3cf   : > { %v2977_v46 = vmax.f32 %v2781_v35, 0.0 }
 0x3d0   : > { %v2976_v52 = vmax.f32 %v2776_v37, 0.0  ;;  %v3679_v40 = vpop.f32.mrb[82].mxu0 }
 0x3d1   : > { %v2791_v51 = vadd.f32 %v3679_v40, %v2322_v47  ;;  %v2785_v48 = vpop.f32.mrb[83].mxu0 }
 0x3d2   : > { %v5477_v57 = vpack.c.bf16 %v2977_v46, %v2976_v52  ;;  %v2786_v50 = vadd.f32 %v2785_v48, %v2317_v53 }
 0x3d3   : > { %v2979_v3 = vmax.f32 %v2791_v51, 0.0 }
 0x3d4   : > { %v2978_v60 = vmax.f32 %v2786_v50, 0.0  ;;  %v3682_v4 = vpop.f32.mrb[84].mxu0 }
 0x3d5   : > { %v2801_v61 = vadd.f32 %v3682_v4, %v5349_v58  ;;  %v2795_v7 = vpop.f32.mrb[85].mxu0 }
 0x3d6   : > { %v5480_v8 = vpack.c.bf16 %v2979_v3, %v2978_v60  ;;  %v2796_v9 = vadd.f32 %v2795_v7, %v5356_v1 }
 0x3d7   : > { %v2981_v49 = vmax.f32 %v2801_v61, 0.0 }
 0x3d8   : > { %v2980_v12 = vmax.f32 %v2796_v9, 0.0  ;;  %v3685_v15 = vpop.f32.mrb[86].mxu0 }
 0x3d9   : > { %v2811_v63 = vadd.f32 %v3685_v15, %v5381_v62  ;;  %v2805_v16 = vpop.f32.mrb[87].mxu0 }
 0x3da   : > { %v3818_v55 = vpack.c.bf16 %v2981_v49, %v2980_v12  ;;  %v2806_v17 = vadd.f32 %v2805_v16, %v5383_v10  ;;  %v3040_v16 = vsub.s32 3, %v5343_v56 }
 0x3db   : > { %v2983_v19 = vmax.f32 %v2811_v63, 0.0 }
 0x3dc   : > { %v2982_v20 = vmax.f32 %v2806_v17, 0.0  ;;  %v3688_v2 = vpop.f32.mrb[88].mxu0  ;;  %3819 = vmatprep.subr.bf16.mxu0 %v3818_v55  ;;  %v3023_v17 = vsub.s32 0, %v5343_v56 }
 0x3dd   : > { %v2821_v58 = vadd.f32 %v3688_v2, %v5406_v18  ;;  %v2815_v22 = vpop.f32.mrb[89].mxu0  ;;  %3821 = vmatpush3.bf16.msra.mxu0 %v5457_v36  ;;  %v2412_v18 = vpop.permute.xlu1 %2411 }
 0x3de   : > { %v3822_v24 = vpack.c.bf16 %v2983_v19, %v2982_v20  ;;  %v2816_v1 = vadd.f32 %v2815_v22, %v5408_v0  ;;  %v2407_v36 = vpop.permute.xlu0 %2406 }
 0x3df   : > { %v2985_v25 = vmax.f32 %v2821_v58, 0.0 }
 0x3e0   : > { %v2984_v11 = vmax.f32 %v2816_v1, 0.0  ;;  %v3691_v29 = vpop.f32.mrb[90].mxu0  ;;  %3823 = vmatprep.subr.bf16.mxu0 %v3822_v24 }
 0x3e1   : > { %v2831_v62 = vadd.f32 %v3691_v29, %v5431_v27  ;;  %v2825_v30 = vpop.f32.mrb[91].mxu0  ;;  %3825 = vmatpush3.bf16.msra.mxu0 %v5461_v6  ;;  %v2422_v52 = vpop.permute.xlu1 %2421 }
 0x3e2   : > { %v3826_v10 = vpack.c.bf16 %v2985_v25, %v2984_v11  ;;  %v2826_v32 = vadd.f32 %v2825_v30, %v5433_v28 }
 0x3e3   : > { %v2987_v26 = vmax.f32 %v2831_v62, 0.0 }
 0x3e4   : > { %v2986_v42 = vmax.f32 %v2826_v32, 0.0  ;;  %v3694_v43 = vpop.f32.mrb[92].mxu0  ;;  %3827 = vmatprep.subr.bf16.mxu0 %v3826_v10 }
 0x3e5   : > { %v2841_v0 = vadd.f32 %v3694_v43, %v5449_v23  ;;  %v2835_v35 = vpop.f32.mrb[93].mxu0  ;;  %3829 = vmatpush3.bf16.msra.mxu0 %v5465_v13  ;;  %v2417_v23 = vpop.permute.xlu0 %2416 }
 0x3e6   : > { %v3830_v44 = vpack.c.bf16 %v2987_v26, %v2986_v42  ;;  %v2836_v27 = vadd.f32 %v2835_v35, %v5451_v34  ;;  %v2432_v4 = vpop.permute.xlu1 %2431 }
 0x3e7   : > { %v2989_v37 = vmax.f32 %v2841_v0, 0.0 }
 0x3e8   : > { %v2988_v46 = vmax.f32 %v2836_v27, 0.0  ;;  %v3697_v6 = vpop.f32.mrb[94].mxu0  ;;  %3831 = vmatprep.subr.bf16.mxu0 %v3830_v44 }
 0x3e9   : > { %v2851_v28 = vadd.f32 %v3697_v6, %v5453_v38  ;;  %v2845_v47 = vpop.f32.mrb[95].mxu0  ;;  %3833 = vmatpush3.bf16.msra.mxu0 %v5467_v21  ;;  %v2427_v7 = vpop.permute.xlu0 %2426 }
 0x3ea   : > { %v3834_v40 = vpack.c.bf16 %v2989_v37, %v2988_v46  ;;  %v2846_v53 = vadd.f32 %v2845_v47, %v5455_v41  ;;  %v2442_v55 = vpop.permute.xlu1 %2441 }
 0x3eb   : > { %v2991_v51 = vmax.f32 %v2851_v28, 0.0 }
 0x3ec   : > { %v2990_v48 = vmax.f32 %v2846_v53, 0.0  ;;  %v3700_v13 = vpop.f32.mrb[96].mxu0  ;;  %3835 = vmatprep.subr.bf16.mxu0 %v3834_v40 }
 0x3ed   : > { %v2861_v34 = vadd.f32 %v3700_v13, %v5459_v5  ;;  %v2855_v50 = vpop.f32.mrb[97].mxu0  ;;  %3837 = vmatpush3.bf16.msra.mxu0 %v5471_v14  ;;  %v2437_v20 = vpop.permute.xlu0 %2436 }
 0x3ee   : > { %v3838_v3 = vpack.c.bf16 %v2991_v51, %v2990_v48  ;;  %v2856_v38 = vadd.f32 %v2855_v50, %v5463_v39  ;;  %v2452_v29 = vpop.permute.xlu1 %2451 }
 0x3ef   : > { %v2993_v60 = vmax.f32 %v2861_v34, 0.0 }
 0x3f0   : > { %v2992_v21 = vmax.f32 %v2856_v38, 0.0  ;;  %v3703_v61 = vpop.f32.mrb[98].mxu0  ;;  %3839 = vmatprep.subr.bf16.mxu0 %v3838_v3 }
 0x3f1   : > { %v2871_v41 = vadd.f32 %v3703_v61, %v5469_v31  ;;  %v2865_v9 = vpop.f32.mrb[99].mxu0  ;;  %3841 = vmatpush3.bf16.msra.mxu0 %v5475_v45  ;;  %v2447_v10 = vpop.permute.xlu0 %2446 }
 0x3f2   : > { %v3842_v49 = vpack.c.bf16 %v2993_v60, %v2992_v21  ;;  %v2866_v5 = vadd.f32 %v2865_v9, %v5473_v33  ;;  %v3029_v33 = vrot.slane %v5354_v59, %v3023_v17  ;;  %v2462_v44 = vpop.permute.xlu1 %2461 }
 0x3f3   : > { %v2995_v12 = vmax.f32 %v2871_v41, 0.0 }
 0x3f4   : > { %v2994_v15 = vmax.f32 %v2866_v5, 0.0  ;;  %v3706_v14 = vpop.f32.mrb[100].mxu0  ;;  %3843 = vmatprep.subr.bf16.mxu0 %v3842_v49 }
 0x3f5   : > { %v2881_v63 = vadd.f32 %v3706_v14, %v2412_v18  ;;  %v2875_v39 = vpop.f32.mrb[101].mxu0  ;;  %3845 = vmatpush3.bf16.msra.mxu0 %v5477_v57  ;;  %v3041_v57 = vrot.slane %v5354_v59, %v3040_v16  ;;  %v2457_v46 = vpop.permute.xlu0 %2456 }
 0x3f6   : > { %v3846_v31 = vpack.c.bf16 %v2995_v12, %v2994_v15  ;;  %v2876_v19 = vadd.f32 %v2875_v39, %v2407_v36  ;;  %v2472_v48 = vpop.permute.xlu1 %2471 }
 0x3f7   : > { %v2997_v45 = vmax.f32 %v2881_v63, 0.0 }
 0x3f8   : > { %v2996_v2 = vmax.f32 %v2876_v19, 0.0  ;;  %v3709_v58 = vpop.f32.mrb[102].mxu0  ;;  %3847 = vmatprep.subr.bf16.mxu0 %v3846_v31 }
 0x3f9   : > { %v2891_v22 = vadd.f32 %v3709_v58, %v2422_v52  ;;  %v2885_v24 = vpop.f32.mrb[103].mxu0  ;;  %3849 = vmatpush3.bf16.msra.mxu0 %v5480_v8  ;;  %v2467_v50 = vpop.permute.xlu0 %2466 }
 0x3fa   : > { %v3851_v1 = vpack.c.bf16 %v2997_v45, %v2996_v2  ;;  %v2886_v25 = vadd.f32 %v2885_v24, %v2417_v23  ;;  %3850 = vmatprep.subr.bf16.mxu0 %v4034_v54  ;;  %v2482_v49 = vpop.permute.xlu1 %2481 }
 0x3fb   : > { %v2999_v11 = vmax.f32 %v2891_v22, 0.0 }
 0x3fc   : > { %v2998_v62 = vmax.f32 %v2886_v25, 0.0  ;;  %v3712_v30 = vpop.f32.mrb[104].mxu0  ;;  %3112 = vmatmul.mubr.f32.vlgmr.msra.gmra.mrb[118].mxu0 %v3029_v33 }
 0x3fd   : > { %v2901_v32 = vadd.f32 %v3712_v30, %v2432_v4  ;;  %v2895_v26 = vpop.f32.mrb[105].mxu0  ;;  %3852 = vmatpush1.bf16.msra.mxu0 %v3851_v1  ;;  %3421 = vmatprep.mubr.msk.f32.mxu0 %vm1631_vm1, %v3041_v57  ;;  %v2477_v15 = vpop.permute.xlu0 %2476 }
 0x3fe   : > { %v3854_v18 = vpack.c.bf16 %v2999_v11, %v2998_v62  ;;  %v2896_v42 = vadd.f32 %v2895_v26, %v2427_v7  ;;  %3853 = vmatprep.subr.bf16.mxu0 %v4034_v54  ;;  %v2492_v45 = vpop.permute.xlu1 %2491 }
 0x3ff   : > { %v3001_v8 = vmax.f32 %v2901_v32, 0.0 }
 0x400   : > { %v3000_v43 = vmax.f32 %v2896_v42, 0.0  ;;  %v3715_v36 = vpop.f32.mrb[106].mxu0 }
 0x401   : > { %v2911_v0 = vadd.f32 %v3715_v36, %v2442_v55  ;;  %v2905_v35 = vpop.f32.mrb[107].mxu0  ;;  %3855 = vmatpush1.bf16.msra.mxu0 %v3854_v18  ;;  %v2487_v58 = vpop.permute.xlu0 %2486 }
 0x402   : > { %v3857_v27 = vpack.c.bf16 %v3001_v8, %v3000_v43  ;;  %v2906_v37 = vadd.f32 %v2905_v35, %v2437_v20  ;;  %3856 = vmatprep.subr.bf16.mxu0 %v4034_v54 }
 0x403   : > { %v3003_v6 = vmax.f32 %v2911_v0, 0.0 }
 0x404   : > { %v3002_v28 = vmax.f32 %v2906_v37, 0.0  ;;  %v3718_v47 = vpop.f32.mrb[108].mxu0 }
 0x405   : > { %v2921_v52 = vadd.f32 %v3718_v47, %v2452_v29  ;;  %v2915_v40 = vpop.f32.mrb[109].mxu0  ;;  %3858 = vmatpush1.bf16.msra.mxu0 %v3857_v27  ;;  %v3036_v29 = vsub.s32 2, %v5343_v56 }
 0x406   : > { %v3860_v53 = vpack.c.bf16 %v3003_v6, %v3002_v28  ;;  %v2916_v23 = vadd.f32 %v2915_v40, %v2447_v10  ;;  %3859 = vmatprep.subr.bf16.mxu0 %v4034_v54  ;;  %v2075_v10 = vpop.f32.mrb[78].mxu1 }
 0x407   : > { %v3005_v51 = vmax.f32 %v2921_v52, 0.0  ;;  %v3037_v30 = vrot.slane %v5354_v59, %v3036_v29  ;;  %v2076_v32 = vpop.f32.mrb[79].mxu1 }
 0x408   : > { %v3004_v13 = vmax.f32 %v2916_v23, 0.0  ;;  %v3721_v34 = vpop.f32.mrb[110].mxu0  ;;  %v2079_v26 = vpop.f32.mrb[80].mxu1 }
 0x409   : > { %v2931_v3 = vadd.f32 %v3721_v34, %v2462_v44  ;;  %v2925_v38 = vpop.f32.mrb[111].mxu0  ;;  %3861 = vmatpush1.bf16.msra.mxu0 %v3860_v53  ;;  %v2080_v18 = vpop.f32.mrb[81].mxu1 }
 0x40a   : > { %v3863_v60 = vpack.c.bf16 %v3005_v51, %v3004_v13  ;;  %v2926_v4 = vadd.f32 %v2925_v38, %v2457_v46  ;;  %3862 = vmatprep.subr.bf16.mxu0 %v4034_v54  ;;  %v2083_v42 = vpop.f32.mrb[82].mxu1  ;;  %v3019_v38 = vpop.permute.xlu0 %3018 }
 0x40b   : > { %v3007_v21 = vmax.f32 %v2931_v3, 0.0  ;;  %v2084_v8 = vpop.f32.mrb[83].mxu1 }
 0x40c   : > { %v3006_v61 = vmax.f32 %v2926_v4, 0.0  ;;  %v3724_v7 = vpop.f32.mrb[112].mxu0  ;;  %v2087_v43 = vpop.f32.mrb[84].mxu1 }
 0x40d   : > { %v2941_v41 = vadd.f32 %v3724_v7, %v2472_v48  ;;  %v2935_v9 = vpop.f32.mrb[113].mxu0  ;;  %3864 = vmatpush1.bf16.msra.mxu0 %v3863_v60  ;;  %v2088_v36 = vpop.f32.mrb[85].mxu1  ;;  %v3024_v60 = vrot.slane %v3019_v38, %v3023_v17 }
 0x40e   : > { %v3866_v5 = vpack.c.bf16 %v3007_v21, %v3006_v61  ;;  %v2936_v12 = vadd.f32 %v2935_v9, %v2467_v50  ;;  %3865 = vmatprep.subr.bf16.mxu0 %v4034_v54  ;;  %v2091_v0 = vpop.f32.mrb[86].mxu1 }
 0x40f   : > { %v3009_v14 = vmax.f32 %v2941_v41, 0.0  ;;  %v2092_v35 = vpop.f32.mrb[87].mxu1 }
 0x410   : > { %v3008_v63 = vmax.f32 %v2936_v12, 0.0  ;;  %v3727_v39 = vpop.f32.mrb[114].mxu0  ;;  %v2095_v44 = vpop.f32.mrb[88].mxu1 }
 0x411   : > { %v2951_v16 = vadd.f32 %v3727_v39, %v2482_v49  ;;  %v2945_v55 = vpop.f32.mrb[115].mxu0  ;;  %3867 = vmatpush1.bf16.msra.mxu0 %v3866_v5  ;;  %v2096_v27 = vpop.f32.mrb[89].mxu1 }
 0x412   : > { %v3869_v31 = vpack.c.bf16 %v3009_v14, %v3008_v63  ;;  %v2946_v19 = vadd.f32 %v2945_v55, %v2477_v15  ;;  %3868 = vmatprep.subr.bf16.mxu0 %v4034_v54  ;;  %v2099_v37 = vpop.f32.mrb[90].mxu1 }
 0x413   : > { %v3011_v20 = vmax.f32 %v2951_v16, 0.0  ;;  %v2100_v46 = vpop.f32.mrb[91].mxu1 }
 0x414   : > { %v3010_v33 = vmax.f32 %v2946_v19, 0.0  ;;  %v3730_v2 = vpop.f32.mrb[116].mxu0  ;;  %v2103_v6 = vpop.f32.mrb[92].mxu1 }
 0x415   : > { %v2961_v22 = vadd.f32 %v3730_v2, %v2492_v45  ;;  %v2955_v24 = vpop.f32.mrb[117].mxu0  ;;  %3870 = vmatpush1.bf16.msra.mxu0 %v3869_v31 }
 0x416   : > { %v3872_v57 = vpack.c.bf16 %v3011_v20, %v3010_v33  ;;  %v2956_v1 = vadd.f32 %v2955_v24, %v2487_v58  ;;  %3871 = vmatprep.subr.bf16.mxu0 %v4034_v54 }
 0x417   : > { %v3013_v25 = vmax.f32 %v2961_v22, 0.0 }
 0x418   : > { %v3012_v11 = vmax.f32 %v2956_v1, 0.0 }
 0x419   : > { %3873 = vmatpush1.bf16.msra.mxu0 %v3872_v57 }
 0x41a   : > { %v3875_v62 = vpack.c.bf16 %v3013_v25, %v3012_v11  ;;  %3874 = vmatprep.subr.bf16.mxu0 %v4034_v54  ;;  %v2104_v54 = vpop.f32.mrb[93].mxu1 }
 0x41b   : > { %v2107_v59 = vpop.f32.mrb[94].mxu1 }
 0x41c   : > { %v2108_v28 = vpop.f32.mrb[95].mxu1 }
 0x41d   : > { %3876 = vmatpush1.bf16.msra.mxu0 %v3875_v62  ;;  %v2111_v47 = vpop.f32.mrb[96].mxu1 }
 0x41e   : > { %v2112_v52 = vpop.f32.mrb[97].mxu1 }
 0x41f   : > { %v2115_v40 = vpop.f32.mrb[98].mxu1 }
 0x420   : > { %3182 = vmatmul.mubr.f32.vlgmr.msra.gmra.mrb[120].mxu0 %v3037_v30  ;;  %v2116_v53 = vpop.f32.mrb[99].mxu1 }
 0x421   : > { %v2119_v23 = vpop.f32.mrb[100].mxu1 }
 0x422   : > { %v2120_v51 = vpop.f32.mrb[101].mxu1 }
 0x423   : > { %v2123_v48 = vpop.f32.mrb[102].mxu1 }
 0x424   : > { %v2124_v13 = vpop.f32.mrb[103].mxu1 }
 0x4cf   : > { %v3564_v34 = vpop.f32.mrb[118].mxu0 }
 0x4d0   : > { %v3565_v50 = vpop.f32.mrb[119].mxu0 }
 0x4d1   : > { %v3566_v3 = vadd.f32 %v3565_v50, %v3564_v34 }
 0x4d3   : > { %v3114_v4 = vadd.f32 %v3566_v3, %v3024_v60 }
 0x4f3   : > { %v3183_v21 = vpop.f32.mrb[120].mxu0 }
 0x4f4   : > { %v3184_v61 = vadd.f32 %v3183_v21, %v3114_v4  ;;  %v3185_v7 = vpop.f32.mrb[121].mxu0 }
 0x4f6   : > { %3187 = vst [vmem:[%s466_s19] sm:$0x1] %v3184_v61 }
 0x4f7   : > { %3982 = shalt.err (!%p3979_p5)
}
 0x4f8   : > { %s3983_s13 = scalar_lea.hbm %s5531_s27, 16  ;;  %s3987_s19 = scalar_lea.hbm %s5585_s10, 32 }
 0x4f9   : > { %p3984_p7 = scmp.ne.s32.totalorder %s5531_s27, %s3983_s13  ;;  %p3988_p12 = scmp.lt.u32.totalorder %s5531_s27, %s5585_s10 }
 0x4fa   : > { %p3989_p13 = scmp.lt.u32.totalorder %s3987_s19, %s3983_s13  ;;  %p3991_p1 = scmp.lt.u32.totalorder %s3983_s13, %s5531_s27 }
 0x4fb   : > { %p3985_p10 = pnand %p3984_p7, %p4136_p6 }
 0x4fc   : > { %p3990_p0 = por %p3989_p13, %p3988_p12 }
 0x4fd   : > { %p3986_p11 = pneg %p3985_p10 }
 0x4fe   : > { %p3992_p2 = por %p3991_p1, %p3990_p0 }
 0x500   : > { %p3993_p3 = pnand %p3992_p2, %p3986_p11 }
 0x502   : > { %3996 = shalt.err (!%p3993_p3)
}
 0x503   : > { %3920 = dma.vmem_to_hbm [thread:$0]  (%p4136_p6), %s5533_s14, 16, %s5531_s27, %s3189_s28  }
 0x504 PF: > { %s3213_s29 = sand.u32 1, %s4019_s15   ;;  %p3923_p4 = pnand %p3282_p9, %p4140_p8 }
 0x505   : > { %s3214_s9 = scalar_lea.sflag [#allocation6], %s3213_s29 }
 0x506   : > { %4014 = dma.done.wait (!%p3923_p4), %s3214_s9, 16  }
 0x507   : > { %4016 = vsyncadd (!%p3923_p4), %s3214_s9, 4294967280  ;;  %p22_p5 = scmp.ge.s32.totalorder %s4117_s20, 4   ;;  %s5589_s15 = smov %s4023_s16 }
 0x508   : > { %s5590_s16 = smov %s4027_s17  ;;  %s5591_s17 = smov %s4130_s23 }
 0x509   : > { %s5592_s18 = smov %s4117_s20  ;;  %24 = sbr.rel (!%p22_p5) target bundleno = 6 (0x6), region = 184 }
 0x510   :  { %3218 = vsyncpa [#allocation6], 1 }
 0x511   :  { %3220 = vsyncpa [#allocation6 + $0x1], 1 }

</bundles_post_ra>
